<compile_context>
chip_gen: v6e
topology: v6e:2x2x1
jax: 0.10.0
libtpu: 0.0.40
codegen_flags: <defaults>
</compile_context>

<pallas_src>
import functools

import jax
import jax.numpy as jnp
import numpy as np
from jax import lax
from jax.experimental import pallas as pl
from jax.experimental.pallas import tpu as pltpu

F32 = jnp.float32


# --------------------------------------------------------------------------
# Constant packing: one lane-dense (rows, lanes) f32 slab for all constants
# --------------------------------------------------------------------------
def pack_slab(consts):
    lanes = max(int(v.shape[1]) for v in consts.values())
    lanes = ((lanes + 127) // 128) * 128
    offsets, blocks, row = {}, [], 0
    for name, v in consts.items():
        v = jnp.asarray(v, F32)
        nr, nc = int(v.shape[0]), int(v.shape[1])
        nr_pad = nr + ((-nr) % 8)                    # 8-row aligned entries
        blocks.append(jnp.zeros((nr_pad, lanes), F32).at[:nr, :nc].set(v))
        offsets[name] = (row, nr, nc)
        row += nr_pad
    return jnp.concatenate(blocks, axis=0), offsets


# --------------------------------------------------------------------------
# The batched SimGNN forward (one pallas_call, grid over pair-steps)
# --------------------------------------------------------------------------
def simgnn_batched_forward(a_steps, f_steps, slab, *, offsets, n1, n2, bins,
                           pairs_per_step):
    num_steps, nrows, _ = a_steps.shape
    f0 = f_steps.shape[2]
    ntot_pad = nrows // pairs_per_step
    k_neurons = offsets["bntn"][2]

    def kernel(a_ref, x_ref, w_ref, o_ref):
        def W(name):
            r0, nr, nc = offsets[name]
            return w_ref[r0:r0 + nr, 0:nc]

        a = a_ref[0]                                  # (NROWS, NROWS) block-diag
        x = x_ref[0]                                  # (NROWS, F0)

        # ---- 3-layer GCN over all 2*P graphs at once (eval mode: no dropout) ----
        h = jnp.dot(x, W("wg1"), preferred_element_type=F32)
        h = jnp.maximum(jnp.dot(a, h, preferred_element_type=F32) + W("bg1"), 0.0)
        h = jnp.dot(h, W("wg2"), preferred_element_type=F32)
        h = jnp.maximum(jnp.dot(a, h, preferred_element_type=F32) + W("bg2"), 0.0)
        h = jnp.dot(h, W("wg3"), preferred_element_type=F32)
        h = jnp.dot(a, h, preferred_element_type=F32) + W("bg3")     # (NROWS, F3)

        # ---- attention pooling, batched over 2*P graphs via segment matmuls ----
        xw = jnp.dot(h, W("watt"), preferred_element_type=F32)             # (NROWS, F3)
        ctx = jnp.tanh(jnp.dot(W("segmean"), xw, preferred_element_type=F32))  # (2P, F3)
        ctx_n = jnp.dot(W("expand"), ctx, preferred_element_type=F32)      # (NROWS, F3)
        gate = jax.nn.sigmoid(jnp.sum(h * ctx_n, axis=1, keepdims=True))   # (NROWS, 1)
        pooled = jnp.dot(W("segsum"), gate * h, preferred_element_type=F32)  # (2P, F3)
        e1 = pooled[:pairs_per_step, :]                                    # (P, F3)
        e2 = pooled[pairs_per_step:, :]                                    # (P, F3)

        # ---- Neural Tensor Network, batched over pairs ----
        u = jnp.dot(e2, W("wntn"), preferred_element_type=F32)             # (P, K*F3)
        e1_t = jnp.concatenate([e1] * k_neurons, axis=1)                   # (P, K*F3)
        bilinear = lax.dot_general(u * e1_t, W("gsumt"),
                                   (((1,), (1,)), ((), ())),
                                   preferred_element_type=F32)             # (P, K)
        block = jnp.dot(jnp.concatenate([e1, e2], axis=1), W("wblk"),
                        preferred_element_type=F32)                        # (P, K)
        ntn = jnp.maximum(bilinear + block + W("bntn"), 0.0)               # (P, K)

        # ---- per-pair similarity histogram (torch.histc), lane-dense bins ----
        bin_iota = lax.broadcasted_iota(jnp.int32, (n1, n2, bins), 2)      # hoisted
        inv_cnt = 1.0 / float(n1 * n2)        # counts always sum to N1*N2 (clipped)
        hists = []
        for p in range(pairs_per_step):
            base = p * ntot_pad
            h1 = h[base:base + n1, :]
            h2 = h[base + n1:base + n1 + n2, :]
            s = lax.dot_general(h1, h2, (((1,), (1,)), ((), ())),
                                preferred_element_type=F32)                # (N1, N2)
            mn, mx = jnp.min(s), jnp.max(s)
            width = (mx - mn) / bins
            safe_w = jnp.where(width > 0, width, 1.0)
            idx = jnp.clip(jnp.floor((s - mn) / safe_w), 0.0, bins - 1.0)
            onehot = (idx.astype(jnp.int32)[:, :, None] == bin_iota).astype(F32)
            counts = jnp.sum(jnp.sum(onehot, axis=0), axis=0)              # (bins,)
            hists.append(counts[None, :] * inv_cnt)                        # (1, bins)
        hist = jnp.concatenate(hists, axis=0)                              # (P, bins)

        # ---- MLP head: [ntn | hist] -> fc1 -> relu -> fc2 -> sigmoid ----
        feat = jnp.concatenate([ntn, hist], axis=1)                        # (P, K+bins)
        z = jnp.maximum(jnp.dot(feat, W("wfc1"), preferred_element_type=F32)
                        + W("bfc1"), 0.0)
        score = jnp.dot(z, W("wfc2"), preferred_element_type=F32) + W("bfc2")
        o_ref[...] = jax.nn.sigmoid(score).reshape(1, pairs_per_step, 1)

    out = pl.pallas_call(
        kernel,
        out_shape=jax.ShapeDtypeStruct((num_steps, pairs_per_step, 1), F32),
        grid_spec=pltpu.PrefetchScalarGridSpec(
            num_scalar_prefetch=0,
            grid=(num_steps,),
            in_specs=[
                pl.BlockSpec((1, nrows, nrows), lambda s: (s, 0, 0)),
                pl.BlockSpec((1, nrows, f0), lambda s: (s, 0, 0)),
                # all weights/constants: one slab, DMA'd once, VMEM-resident
                pl.BlockSpec(slab.shape, lambda s: (0, 0)),
            ],
            out_specs=pl.BlockSpec((1, pairs_per_step, 1), lambda s: (s, 0, 0)),
        ),
        compiler_params=pltpu.CompilerParams(
            dimension_semantics=("parallel",)),      # shard pair-steps across TCs
    )(a_steps, f_steps, slab)
    return out.reshape(num_steps * pairs_per_step, 1)


# --------------------------------------------------------------------------
# Glue: params (PyTorch layout), one-time constant re-layout, graph assembly
# --------------------------------------------------------------------------
def init_params(key, num_labels, f1, f2, f3, k_neurons, bottleneck, bins):
    ks = jax.random.split(key, 8)

    def dense(k, fan_in, fan_out):
        scale = 1.0 / jnp.sqrt(jnp.asarray(fan_in, F32))
        return jax.random.normal(k, (fan_in, fan_out), F32) * scale

    feature_count = k_neurons + bins  # histogram == True
    return {
        "w_gcn1": dense(ks[0], num_labels, f1), "b_gcn1": jnp.zeros((1, f1), F32),
        "w_gcn2": dense(ks[1], f1, f2),         "b_gcn2": jnp.zeros((1, f2), F32),
        "w_gcn3": dense(ks[2], f2, f3),         "b_gcn3": jnp.zeros((1, f3), F32),
        "w_att": dense(ks[3], f3, f3),
        "w_ntn": jax.random.normal(ks[4], (f3, f3, k_neurons), F32) * 0.1,
        "w_block": jax.random.normal(ks[5], (k_neurons, 2 * f3), F32) * 0.1,
        "b_ntn": jnp.zeros((k_neurons, 1), F32),
        "w_fc1": dense(ks[6], feature_count, bottleneck),
        "b_fc1": jnp.zeros((1, bottleneck), F32),
        "w_fc2": dense(ks[7], bottleneck, 1),
        "b_fc2": jnp.zeros((1, 1), F32),
    }


def segment_matrices(n1, n2, pairs_per_step):
    ntot = n1 + n2
    ntot_pad = ((ntot + 7) // 8) * 8
    nrows = pairs_per_step * ntot_pad
    seg = np.zeros((2 * pairs_per_step, nrows), np.float32)
    for p in range(pairs_per_step):
        base = p * ntot_pad
        seg[p, base:base + n1] = 1.0
        seg[pairs_per_step + p, base + n1:base + ntot] = 1.0
    counts = np.array([n1] * pairs_per_step + [n2] * pairs_per_step, np.float32)
    return (jnp.asarray(seg / counts[:, None]),   # segmean (2P, NROWS)
            jnp.asarray(seg),                     # segsum  (2P, NROWS)
            jnp.asarray(seg.T))                   # expand  (NROWS, 2P)


def prepare_constants(p, n1, n2, pairs_per_step):
    """One-time re-layout of PyTorch-style params into a single packed slab."""
    f3 = p["w_att"].shape[0]
    k = p["b_ntn"].shape[0]
    seg_mean, seg_sum, expand = segment_matrices(n1, n2, pairs_per_step)
    consts = {
        "wg1": p["w_gcn1"], "bg1": p["b_gcn1"],
        "wg2": p["w_gcn2"], "bg2": p["b_gcn2"],
        "wg3": p["w_gcn3"], "bg3": p["b_gcn3"],
        "watt": p["w_att"],
        # wntn[j, k*F3 + i] == W[i, j, k]
        "wntn": jnp.transpose(p["w_ntn"], (1, 2, 0)).reshape(f3, k * f3),
        # group-sum (transposed): gsumt[k, k*F3 + i] == 1
        "gsumt": jnp.kron(jnp.eye(k, dtype=F32), jnp.ones((1, f3), F32)),
        "wblk": p["w_block"].T,                 # (2*F3, K)
        "bntn": p["b_ntn"].reshape(1, k),
        "wfc1": p["w_fc1"], "bfc1": p["b_fc1"],
        "wfc2": p["w_fc2"], "bfc2": p["b_fc2"],
        "segmean": seg_mean, "segsum": seg_sum, "expand": expand,
    }
    return pack_slab(consts)


def normalized_adjacency(edge_index, n):
    """D^{-1/2} (A + I) D^{-1/2}, as in GCNConv. Static per graph (hoisted)."""
    a = jnp.zeros((n, n), F32).at[edge_index[0], edge_index[1]].set(1.0)
    a = a + jnp.eye(n, dtype=F32)
    deg = jnp.sum(a, axis=1)
    dinv = lax.rsqrt(deg)
    return a * dinv[:, None] * dinv[None, :]


def ring_edge_index(n, extra=()):
    src = jnp.arange(n, dtype=jnp.int32)
    dst = (src + 1) % n
    srcs, dsts = [src, dst], [dst, src]
    for (u, v) in extra:
        srcs.append(jnp.array([u, v], jnp.int32))
        dsts.append(jnp.array([v, u], jnp.int32))
    return jnp.stack([jnp.concatenate(srcs), jnp.concatenate(dsts)])


def assemble_steps(a1_list, a2_list, feats1, feats2, n1, n2, pairs_per_step):
    """Per-step block-diagonal adjacency + stacked features (8-row padded slots)."""
    b = len(a1_list)
    num_steps = b // pairs_per_step
    ntot = n1 + n2
    ntot_pad = ((ntot + 7) // 8) * 8
    nrows = pairs_per_step * ntot_pad
    f0 = feats1.shape[-1]
    a_steps = np.zeros((num_steps, nrows, nrows), np.float32)
    f_steps = np.zeros((num_steps, nrows, f0), np.float32)
    for s in range(num_steps):
        for p in range(pairs_per_step):
            i = s * pairs_per_step + p
            base = p * ntot_pad
            a_steps[s, base:base + n1, base:base + n1] = np.asarray(a1_list[i])
            a_steps[s, base + n1:base + ntot, base + n1:base + ntot] = np.asarray(a2_list[i])
            f_steps[s, base:base + n1, :] = np.asarray(feats1[i])
            f_steps[s, base + n1:base + ntot, :] = np.asarray(feats2[i])
    return jnp.asarray(a_steps), jnp.asarray(f_steps)


# --------------------------------------------------------------------------
# Pure-JAX reference (mirrors the PyTorch module) for a correctness check
# --------------------------------------------------------------------------
def simgnn_reference(p, a1, f1, a2, f2, bins):
    def gcn_pass(a, x):
        h = jax.nn.relu(a @ (x @ p["w_gcn1"]) + p["b_gcn1"])
        h = jax.nn.relu(a @ (h @ p["w_gcn2"]) + p["b_gcn2"])
        return a @ (h @ p["w_gcn3"]) + p["b_gcn3"]

    def attention(x):
        ctx = jnp.tanh(jnp.mean(x @ p["w_att"], axis=0))
        sig = jax.nn.sigmoid(x @ ctx[:, None])
        return x.T @ sig                                   # (F3, 1)

    h1 = gcn_pass(a1, f1)
    h2 = gcn_pass(a2, f2)

    s = (h1 @ h2.T).reshape(-1)
    mn, mx = jnp.min(s), jnp.max(s)
    w = (mx - mn) / bins
    w = jnp.where(w > 0, w, 1.0)
    idx = jnp.clip(jnp.floor((s - mn) / w), 0, bins - 1).astype(jnp.int32)
    counts = jnp.zeros((bins,), F32).at[idx].add(1.0)
    hist = (counts / jnp.sum(counts))[None, :]             # (1, bins)

    e1 = attention(h1)
    e2 = attention(h2)
    bilinear = jnp.einsum("i,ijk,j->k", e1[:, 0], p["w_ntn"], e2[:, 0])
    block = p["w_block"] @ jnp.concatenate([e1, e2], axis=0)
    ntn = jax.nn.relu(bilinear[:, None] + block + p["b_ntn"])    # (K, 1)

    feat = jnp.concatenate([ntn.T, hist], axis=1)               # (1, K + bins)
    h = jax.nn.relu(feat @ p["w_fc1"] + p["b_fc1"])
    return jax.nn.sigmoid(h @ p["w_fc2"] + p["b_fc2"])


if __name__ == "__main__":
    # SimGNN "args"
    NUM_LABELS = 8
    FILTERS_1, FILTERS_2, FILTERS_3 = 32, 16, 16
    TENSOR_NEURONS, BOTTLENECK, BINS = 16, 16, 16
    N1, N2 = 8, 12                      # nodes per graph (fixed across the batch)
    PAIRS_PER_STEP = 4                  # pairs stacked per grid step
    NUM_STEPS = 4
    B_PAIRS = PAIRS_PER_STEP * NUM_STEPS

    key = jax.random.PRNGKey(0)
    k_par, k_f1, k_f2 = jax.random.split(key, 3)

    params = init_params(k_par, NUM_LABELS, FILTERS_1, FILTERS_2, FILTERS_3,
                         TENSOR_NEURONS, BOTTLENECK, BINS)
    slab, offsets = prepare_constants(params, N1, N2, PAIRS_PER_STEP)

    # deterministic batch of graph pairs
    feats1 = jax.random.normal(k_f1, (B_PAIRS, N1, NUM_LABELS), F32)
    feats2 = jax.random.normal(k_f2, (B_PAIRS, N2, NUM_LABELS), F32)
    a1_list = [normalized_adjacency(
        ring_edge_index(N1, extra=[(0, 2 + p % (N1 - 3))]), N1) for p in range(B_PAIRS)]
    a2_list = [normalized_adjacency(
        ring_edge_index(N2, extra=[(1, 3 + p % (N2 - 4))]), N2) for p in range(B_PAIRS)]

    a_steps, f_steps = assemble_steps(a1_list, a2_list, feats1, feats2,
                                      N1, N2, PAIRS_PER_STEP)

    fwd = jax.jit(functools.partial(simgnn_batched_forward,
                                    offsets=offsets, n1=N1, n2=N2, bins=BINS,
                                    pairs_per_step=PAIRS_PER_STEP))
    scores = jax.block_until_ready(fwd(a_steps, f_steps, slab))   # (B_PAIRS, 1)

    assert scores.shape == (B_PAIRS, 1)
    assert bool(jnp.isfinite(scores).all())

    # correctness vs a pure-JAX mirror of the PyTorch module, pair by pair
    with jax.default_matmul_precision("highest"):
        ref = jnp.concatenate(
            [simgnn_reference(params, a1_list[i], feats1[i], a2_list[i], feats2[i], BINS)
             for i in range(B_PAIRS)], axis=0)
    assert bool(jnp.allclose(scores, ref, atol=5e-3)), (scores, ref)

    print("KERNEL_OK")
</pallas_src>

<mosaic_0001>
module attributes {stable_mosaic.version = 11 : i64} {
  func.func @kernel(%arg0: i32, %arg1: memref<1x96x96xf32, #tpu.memory_space<vmem>>, %arg2: memref<1x96x8xf32, #tpu.memory_space<vmem>>, %arg3: memref<344x256xf32, #tpu.memory_space<vmem>>, %arg4: memref<1x4x1xf32, #tpu.memory_space<vmem>>) attributes {dimension_semantics = [#tpu.dimension_semantics<parallel>], iteration_bounds = array<i64: 4>, scalar_prefetch = 0 : i64, scratch_operands = 0 : i64, tpu.core_type = #tpu.core_type<tc>, window_params = [{transform_indices = @transform_0, window_bounds = array<i64: 1, 96, 96>}, {transform_indices = @transform_1, window_bounds = array<i64: 1, 96, 8>}, {pipeline_mode = #tpu.pipeline_mode<synchronous>, transform_indices = @transform_2, window_bounds = array<i64: 344, 256>}, {transform_indices = @transform_3, window_bounds = array<i64: 1, 4, 1>}]} {
    %c0 = arith.constant 0 : index
    %c0_0 = arith.constant 0 : index
    %c0_1 = arith.constant 0 : index
    %0 = vector.load %arg1[%c0, %c0_0, %c0_1] : memref<1x96x96xf32, #tpu.memory_space<vmem>>, vector<1x96x96xf32>
    %1 = vector.shape_cast %0 : vector<1x96x96xf32> to vector<96x96xf32>
    %c0_2 = arith.constant 0 : index
    %c0_3 = arith.constant 0 : index
    %c0_4 = arith.constant 0 : index
    %2 = vector.load %arg2[%c0_2, %c0_3, %c0_4] : memref<1x96x8xf32, #tpu.memory_space<vmem>>, vector<1x96x8xf32>
    %3 = vector.shape_cast %2 : vector<1x96x8xf32> to vector<96x8xf32>
    %c0_5 = arith.constant 0 : index
    %c0_6 = arith.constant 0 : index
    %4 = vector.load %arg3[%c0_5, %c0_6] : memref<344x256xf32, #tpu.memory_space<vmem>>, vector<8x32xf32>
    %cst = arith.constant dense<0.000000e+00> : vector<96x32xf32>
    %5 = tpu.matmul %3, %4, %cst {dimension_numbers = #tpu.dot_dimension_numbers<[1], [0], [0], [1], [0, 0, 1, 1], [], []>} : vector<96x8xf32>, vector<8x32xf32>, vector<96x32xf32> -> vector<96x32xf32>
    %cst_7 = arith.constant dense<0.000000e+00> : vector<96x32xf32>
    %6 = tpu.matmul %1, %5, %cst_7 {dimension_numbers = #tpu.dot_dimension_numbers<[1], [0], [0], [1], [0, 0, 1, 1], [], []>} : vector<96x96xf32>, vector<96x32xf32>, vector<96x32xf32> -> vector<96x32xf32>
    %c8 = arith.constant 8 : index
    %c0_8 = arith.constant 0 : index
    %7 = vector.load %arg3[%c8, %c0_8] : memref<344x256xf32, #tpu.memory_space<vmem>>, vector<1x32xf32>
    %8 = vector.broadcast %7 : vector<1x32xf32> to vector<96x32xf32>
    %9 = arith.addf %6, %8 : vector<96x32xf32>
    %cst_9 = arith.constant 0.000000e+00 : f32
    %10 = vector.broadcast %cst_9 : f32 to vector<96x32xf32>
    %11 = arith.maximumf %9, %10 : vector<96x32xf32>
    %c16 = arith.constant 16 : index
    %c0_10 = arith.constant 0 : index
    %12 = vector.load %arg3[%c16, %c0_10] : memref<344x256xf32, #tpu.memory_space<vmem>>, vector<32x16xf32>
    %cst_11 = arith.constant dense<0.000000e+00> : vector<96x16xf32>
    %13 = tpu.matmul %11, %12, %cst_11 {dimension_numbers = #tpu.dot_dimension_numbers<[1], [0], [0], [1], [0, 0, 1, 1], [], []>} : vector<96x32xf32>, vector<32x16xf32>, vector<96x16xf32> -> vector<96x16xf32>
    %cst_12 = arith.constant dense<0.000000e+00> : vector<96x16xf32>
    %14 = tpu.matmul %1, %13, %cst_12 {dimension_numbers = #tpu.dot_dimension_numbers<[1], [0], [0], [1], [0, 0, 1, 1], [], []>} : vector<96x96xf32>, vector<96x16xf32>, vector<96x16xf32> -> vector<96x16xf32>
    %c48 = arith.constant 48 : index
    %c0_13 = arith.constant 0 : index
    %15 = vector.load %arg3[%c48, %c0_13] : memref<344x256xf32, #tpu.memory_space<vmem>>, vector<1x16xf32>
    %16 = vector.broadcast %15 : vector<1x16xf32> to vector<96x16xf32>
    %17 = arith.addf %14, %16 : vector<96x16xf32>
    %cst_14 = arith.constant 0.000000e+00 : f32
    %18 = vector.broadcast %cst_14 : f32 to vector<96x16xf32>
    %19 = arith.maximumf %17, %18 : vector<96x16xf32>
    %c56 = arith.constant 56 : index
    %c0_15 = arith.constant 0 : index
    %20 = vector.load %arg3[%c56, %c0_15] : memref<344x256xf32, #tpu.memory_space<vmem>>, vector<16x16xf32>
    %cst_16 = arith.constant dense<0.000000e+00> : vector<96x16xf32>
    %21 = tpu.matmul %19, %20, %cst_16 {dimension_numbers = #tpu.dot_dimension_numbers<[1], [0], [0], [1], [0, 0, 1, 1], [], []>} : vector<96x16xf32>, vector<16x16xf32>, vector<96x16xf32> -> vector<96x16xf32>
    %cst_17 = arith.constant dense<0.000000e+00> : vector<96x16xf32>
    %22 = tpu.matmul %1, %21, %cst_17 {dimension_numbers = #tpu.dot_dimension_numbers<[1], [0], [0], [1], [0, 0, 1, 1], [], []>} : vector<96x96xf32>, vector<96x16xf32>, vector<96x16xf32> -> vector<96x16xf32>
    %c72 = arith.constant 72 : index
    %c0_18 = arith.constant 0 : index
    %23 = vector.load %arg3[%c72, %c0_18] : memref<344x256xf32, #tpu.memory_space<vmem>>, vector<1x16xf32>
    %24 = vector.broadcast %23 : vector<1x16xf32> to vector<96x16xf32>
    %25 = arith.addf %22, %24 : vector<96x16xf32>
    %c80 = arith.constant 80 : index
    %c0_19 = arith.constant 0 : index
    %26 = vector.load %arg3[%c80, %c0_19] : memref<344x256xf32, #tpu.memory_space<vmem>>, vector<16x16xf32>
    %cst_20 = arith.constant dense<0.000000e+00> : vector<96x16xf32>
    %27 = tpu.matmul %25, %26, %cst_20 {dimension_numbers = #tpu.dot_dimension_numbers<[1], [0], [0], [1], [0, 0, 1, 1], [], []>} : vector<96x16xf32>, vector<16x16xf32>, vector<96x16xf32> -> vector<96x16xf32>
    %c232 = arith.constant 232 : index
    %c0_21 = arith.constant 0 : index
    %28 = vector.load %arg3[%c232, %c0_21] : memref<344x256xf32, #tpu.memory_space<vmem>>, vector<8x96xf32>
    %cst_22 = arith.constant dense<0.000000e+00> : vector<8x16xf32>
    %29 = tpu.matmul %28, %27, %cst_22 {dimension_numbers = #tpu.dot_dimension_numbers<[1], [0], [0], [1], [0, 0, 1, 1], [], []>} : vector<8x96xf32>, vector<96x16xf32>, vector<8x16xf32> -> vector<8x16xf32>
    %30 = math.tanh %29 : vector<8x16xf32>
    %c248 = arith.constant 248 : index
    %c0_23 = arith.constant 0 : index
    %31 = vector.load %arg3[%c248, %c0_23] : memref<344x256xf32, #tpu.memory_space<vmem>>, vector<96x8xf32>
    %cst_24 = arith.constant dense<0.000000e+00> : vector<96x16xf32>
    %32 = tpu.matmul %31, %30, %cst_24 {dimension_numbers = #tpu.dot_dimension_numbers<[1], [0], [0], [1], [0, 0, 1, 1], [], []>} : vector<96x8xf32>, vector<8x16xf32>, vector<96x16xf32> -> vector<96x16xf32>
    %33 = arith.mulf %25, %32 : vector<96x16xf32>
    %cst_25 = arith.constant dense<0.000000e+00> : vector<96xf32>
    %34 = vector.multi_reduction <add>, %33, %cst_25 [1] : vector<96x16xf32> to vector<96xf32>
    %35 = vector.shape_cast %34 : vector<96xf32> to vector<96x1xf32>
    %36 = arith.negf %35 : vector<96x1xf32>
    %37 = math.exp %36 : vector<96x1xf32>
    %cst_26 = arith.constant 1.000000e+00 : f32
    %38 = vector.broadcast %cst_26 : f32 to vector<96x1xf32>
    %39 = arith.addf %38, %37 : vector<96x1xf32>
    %40 = arith.divf %38, %39 : vector<96x1xf32>
    %c240 = arith.constant 240 : index
    %c0_27 = arith.constant 0 : index
    %41 = vector.load %arg3[%c240, %c0_27] : memref<344x256xf32, #tpu.memory_space<vmem>>, vector<8x96xf32>
    %42 = vector.broadcast %40 : vector<96x1xf32> to vector<96x16xf32>
    %43 = arith.mulf %42, %25 : vector<96x16xf32>
    %cst_28 = arith.constant dense<0.000000e+00> : vector<8x16xf32>
    %44 = tpu.matmul %41, %43, %cst_28 {dimension_numbers = #tpu.dot_dimension_numbers<[1], [0], [0], [1], [0, 0, 1, 1], [], []>} : vector<8x96xf32>, vector<96x16xf32>, vector<8x16xf32> -> vector<8x16xf32>
    %45 = vector.extract_strided_slice %44 {offsets = [0, 0], sizes = [4, 16], strides = [1, 1]} : vector<8x16xf32> to vector<4x16xf32>
    %46 = vector.extract_strided_slice %44 {offsets = [4, 0], sizes = [4, 16], strides = [1, 1]} : vector<8x16xf32> to vector<4x16xf32>
    %c96 = arith.constant 96 : index
    %c0_29 = arith.constant 0 : index
    %47 = vector.load %arg3[%c96, %c0_29] : memref<344x256xf32, #tpu.memory_space<vmem>>, vector<16x256xf32>
    %cst_30 = arith.constant dense<0.000000e+00> : vector<4x256xf32>
    %48 = tpu.matmul %46, %47, %cst_30 {dimension_numbers = #tpu.dot_dimension_numbers<[1], [0], [0], [1], [0, 0, 1, 1], [], []>} : vector<4x16xf32>, vector<16x256xf32>, vector<4x256xf32> -> vector<4x256xf32>
    %49 = tpu.concatenate %45, %45, %45, %45, %45, %45, %45, %45, %45, %45, %45, %45, %45, %45, %45, %45 in 1 : vector<4x16xf32>, vector<4x16xf32>, vector<4x16xf32>, vector<4x16xf32>, vector<4x16xf32>, vector<4x16xf32>, vector<4x16xf32>, vector<4x16xf32>, vector<4x16xf32>, vector<4x16xf32>, vector<4x16xf32>, vector<4x16xf32>, vector<4x16xf32>, vector<4x16xf32>, vector<4x16xf32>, vector<4x16xf32> -> vector<4x256xf32>
    %50 = arith.mulf %48, %49 : vector<4x256xf32>
    %c112 = arith.constant 112 : index
    %c0_31 = arith.constant 0 : index
    %51 = vector.load %arg3[%c112, %c0_31] : memref<344x256xf32, #tpu.memory_space<vmem>>, vector<16x256xf32>
    %cst_32 = arith.constant dense<0.000000e+00> : vector<4x16xf32>
    %52 = tpu.matmul %50, %51, %cst_32 {dimension_numbers = #tpu.dot_dimension_numbers<[1], [1], [0], [0], [0, 0, 1, 0], [], []>} : vector<4x256xf32>, vector<16x256xf32>, vector<4x16xf32> -> vector<4x16xf32>
    %53 = tpu.concatenate %45, %46 in 1 : vector<4x16xf32>, vector<4x16xf32> -> vector<4x32xf32>
    %c128 = arith.constant 128 : index
    %c0_33 = arith.constant 0 : index
    %54 = vector.load %arg3[%c128, %c0_33] : memref<344x256xf32, #tpu.memory_space<vmem>>, vector<32x16xf32>
    %cst_34 = arith.constant dense<0.000000e+00> : vector<4x16xf32>
    %55 = tpu.matmul %53, %54, %cst_34 {dimension_numbers = #tpu.dot_dimension_numbers<[1], [0], [0], [1], [0, 0, 1, 1], [], []>} : vector<4x32xf32>, vector<32x16xf32>, vector<4x16xf32> -> vector<4x16xf32>
    %56 = arith.addf %52, %55 : vector<4x16xf32>
    %c160 = arith.constant 160 : index
    %c0_35 = arith.constant 0 : index
    %57 = vector.load %arg3[%c160, %c0_35] : memref<344x256xf32, #tpu.memory_space<vmem>>, vector<1x16xf32>
    %58 = vector.broadcast %57 : vector<1x16xf32> to vector<4x16xf32>
    %59 = arith.addf %56, %58 : vector<4x16xf32>
    %cst_36 = arith.constant 0.000000e+00 : f32
    %60 = vector.broadcast %cst_36 : f32 to vector<4x16xf32>
    %61 = arith.maximumf %59, %60 : vector<4x16xf32>
    %62 = tpu.iota {dimensions = array<i32: 2>} : vector<8x12x16xi32>
    %63 = vector.extract_strided_slice %25 {offsets = [0, 0], sizes = [8, 16], strides = [1, 1]} : vector<96x16xf32> to vector<8x16xf32>
    %64 = vector.extract_strided_slice %25 {offsets = [8, 0], sizes = [12, 16], strides = [1, 1]} : vector<96x16xf32> to vector<12x16xf32>
    %cst_37 = arith.constant dense<0.000000e+00> : vector<8x12xf32>
    %65 = tpu.matmul %63, %64, %cst_37 {dimension_numbers = #tpu.dot_dimension_numbers<[1], [1], [0], [0], [0, 0, 1, 0], [], []>} : vector<8x16xf32>, vector<12x16xf32>, vector<8x12xf32> -> vector<8x12xf32>
    %66 = vector.shape_cast %65 : vector<8x12xf32> to vector<1x8x12xf32>
    %cst_38 = arith.constant dense<0x7F800000> : vector<1xf32>
    %67 = vector.multi_reduction <minimumf>, %66, %cst_38 [1, 2] : vector<1x8x12xf32> to vector<1xf32>
    %68 = vector.shape_cast %67 : vector<1xf32> to vector<1x1x1xf32>
    %69 = vector.extract %68[0, 0, 0] : f32 from vector<1x1x1xf32>
    %70 = vector.shape_cast %65 : vector<8x12xf32> to vector<1x8x12xf32>
    %cst_39 = arith.constant dense<0xFF800000> : vector<1xf32>
    %71 = vector.multi_reduction <maximumf>, %70, %cst_39 [1, 2] : vector<1x8x12xf32> to vector<1xf32>
    %72 = vector.shape_cast %71 : vector<1xf32> to vector<1x1x1xf32>
    %73 = vector.extract %72[0, 0, 0] : f32 from vector<1x1x1xf32>
    %74 = arith.subf %73, %69 : f32
    %cst_40 = arith.constant 1.600000e+01 : f32
    %75 = arith.divf %74, %cst_40 : f32
    %cst_41 = arith.constant 0.000000e+00 : f32
    %76 = arith.cmpf ogt, %75, %cst_41 : f32
    %cst_42 = arith.constant 1.000000e+00 : f32
    %77 = arith.select %76, %75, %cst_42 : f32
    %78 = vector.broadcast %69 : f32 to vector<8x12xf32>
    %79 = arith.subf %65, %78 : vector<8x12xf32>
    %80 = vector.broadcast %77 : f32 to vector<8x12xf32>
    %81 = arith.divf %79, %80 : vector<8x12xf32>
    %82 = math.floor %81 : vector<8x12xf32>
    %cst_43 = arith.constant 0.000000e+00 : f32
    %cst_44 = arith.constant 1.500000e+01 : f32
    %83 = vector.broadcast %cst_43 : f32 to vector<8x12xf32>
    %84 = arith.maximumf %83, %82 : vector<8x12xf32>
    %85 = vector.broadcast %cst_44 : f32 to vector<8x12xf32>
    %86 = arith.minimumf %85, %84 : vector<8x12xf32>
    %87 = arith.fptosi %86 : vector<8x12xf32> to vector<8x12xi32>
    %88 = vector.shape_cast %87 : vector<8x12xi32> to vector<8x12x1xi32>
    %89 = vector.broadcast %88 : vector<8x12x1xi32> to vector<8x12x16xi32>
    %90 = arith.cmpi eq, %89, %62 : vector<8x12x16xi32>
    %91 = arith.extui %90 : vector<8x12x16xi1> to vector<8x12x16xi32>
    %92 = arith.sitofp %91 : vector<8x12x16xi32> to vector<8x12x16xf32>
    %cst_45 = arith.constant dense<0.000000e+00> : vector<12x16xf32>
    %93 = vector.multi_reduction <add>, %92, %cst_45 [0] : vector<8x12x16xf32> to vector<12x16xf32>
    %cst_46 = arith.constant dense<0.000000e+00> : vector<16xf32>
    %94 = vector.multi_reduction <add>, %93, %cst_46 [0] : vector<12x16xf32> to vector<16xf32>
    %95 = vector.shape_cast %94 : vector<16xf32> to vector<1x16xf32>
    %cst_47 = arith.constant 0.010416667 : f32
    %96 = vector.broadcast %cst_47 : f32 to vector<1x16xf32>
    %97 = arith.mulf %95, %96 : vector<1x16xf32>
    %98 = vector.extract_strided_slice %25 {offsets = [24, 0], sizes = [8, 16], strides = [1, 1]} : vector<96x16xf32> to vector<8x16xf32>
    %99 = vector.extract_strided_slice %25 {offsets = [32, 0], sizes = [12, 16], strides = [1, 1]} : vector<96x16xf32> to vector<12x16xf32>
    %cst_48 = arith.constant dense<0.000000e+00> : vector<8x12xf32>
    %100 = tpu.matmul %98, %99, %cst_48 {dimension_numbers = #tpu.dot_dimension_numbers<[1], [1], [0], [0], [0, 0, 1, 0], [], []>} : vector<8x16xf32>, vector<12x16xf32>, vector<8x12xf32> -> vector<8x12xf32>
    %101 = vector.shape_cast %100 : vector<8x12xf32> to vector<1x8x12xf32>
    %cst_49 = arith.constant dense<0x7F800000> : vector<1xf32>
    %102 = vector.multi_reduction <minimumf>, %101, %cst_49 [1, 2] : vector<1x8x12xf32> to vector<1xf32>
    %103 = vector.shape_cast %102 : vector<1xf32> to vector<1x1x1xf32>
    %104 = vector.extract %103[0, 0, 0] : f32 from vector<1x1x1xf32>
    %105 = vector.shape_cast %100 : vector<8x12xf32> to vector<1x8x12xf32>
    %cst_50 = arith.constant dense<0xFF800000> : vector<1xf32>
    %106 = vector.multi_reduction <maximumf>, %105, %cst_50 [1, 2] : vector<1x8x12xf32> to vector<1xf32>
    %107 = vector.shape_cast %106 : vector<1xf32> to vector<1x1x1xf32>
    %108 = vector.extract %107[0, 0, 0] : f32 from vector<1x1x1xf32>
    %109 = arith.subf %108, %104 : f32
    %cst_51 = arith.constant 1.600000e+01 : f32
    %110 = arith.divf %109, %cst_51 : f32
    %cst_52 = arith.constant 0.000000e+00 : f32
    %111 = arith.cmpf ogt, %110, %cst_52 : f32
    %cst_53 = arith.constant 1.000000e+00 : f32
    %112 = arith.select %111, %110, %cst_53 : f32
    %113 = vector.broadcast %104 : f32 to vector<8x12xf32>
    %114 = arith.subf %100, %113 : vector<8x12xf32>
    %115 = vector.broadcast %112 : f32 to vector<8x12xf32>
    %116 = arith.divf %114, %115 : vector<8x12xf32>
    %117 = math.floor %116 : vector<8x12xf32>
    %cst_54 = arith.constant 0.000000e+00 : f32
    %cst_55 = arith.constant 1.500000e+01 : f32
    %118 = vector.broadcast %cst_54 : f32 to vector<8x12xf32>
    %119 = arith.maximumf %118, %117 : vector<8x12xf32>
    %120 = vector.broadcast %cst_55 : f32 to vector<8x12xf32>
    %121 = arith.minimumf %120, %119 : vector<8x12xf32>
    %122 = arith.fptosi %121 : vector<8x12xf32> to vector<8x12xi32>
    %123 = vector.shape_cast %122 : vector<8x12xi32> to vector<8x12x1xi32>
    %124 = vector.broadcast %123 : vector<8x12x1xi32> to vector<8x12x16xi32>
    %125 = arith.cmpi eq, %124, %62 : vector<8x12x16xi32>
    %126 = arith.extui %125 : vector<8x12x16xi1> to vector<8x12x16xi32>
    %127 = arith.sitofp %126 : vector<8x12x16xi32> to vector<8x12x16xf32>
    %cst_56 = arith.constant dense<0.000000e+00> : vector<12x16xf32>
    %128 = vector.multi_reduction <add>, %127, %cst_56 [0] : vector<8x12x16xf32> to vector<12x16xf32>
    %cst_57 = arith.constant dense<0.000000e+00> : vector<16xf32>
    %129 = vector.multi_reduction <add>, %128, %cst_57 [0] : vector<12x16xf32> to vector<16xf32>
    %130 = vector.shape_cast %129 : vector<16xf32> to vector<1x16xf32>
    %cst_58 = arith.constant 0.010416667 : f32
    %131 = vector.broadcast %cst_58 : f32 to vector<1x16xf32>
    %132 = arith.mulf %130, %131 : vector<1x16xf32>
    %133 = vector.extract_strided_slice %25 {offsets = [48, 0], sizes = [8, 16], strides = [1, 1]} : vector<96x16xf32> to vector<8x16xf32>
    %134 = vector.extract_strided_slice %25 {offsets = [56, 0], sizes = [12, 16], strides = [1, 1]} : vector<96x16xf32> to vector<12x16xf32>
    %cst_59 = arith.constant dense<0.000000e+00> : vector<8x12xf32>
    %135 = tpu.matmul %133, %134, %cst_59 {dimension_numbers = #tpu.dot_dimension_numbers<[1], [1], [0], [0], [0, 0, 1, 0], [], []>} : vector<8x16xf32>, vector<12x16xf32>, vector<8x12xf32> -> vector<8x12xf32>
    %136 = vector.shape_cast %135 : vector<8x12xf32> to vector<1x8x12xf32>
    %cst_60 = arith.constant dense<0x7F800000> : vector<1xf32>
    %137 = vector.multi_reduction <minimumf>, %136, %cst_60 [1, 2] : vector<1x8x12xf32> to vector<1xf32>
    %138 = vector.shape_cast %137 : vector<1xf32> to vector<1x1x1xf32>
    %139 = vector.extract %138[0, 0, 0] : f32 from vector<1x1x1xf32>
    %140 = vector.shape_cast %135 : vector<8x12xf32> to vector<1x8x12xf32>
    %cst_61 = arith.constant dense<0xFF800000> : vector<1xf32>
    %141 = vector.multi_reduction <maximumf>, %140, %cst_61 [1, 2] : vector<1x8x12xf32> to vector<1xf32>
    %142 = vector.shape_cast %141 : vector<1xf32> to vector<1x1x1xf32>
    %143 = vector.extract %142[0, 0, 0] : f32 from vector<1x1x1xf32>
    %144 = arith.subf %143, %139 : f32
    %cst_62 = arith.constant 1.600000e+01 : f32
    %145 = arith.divf %144, %cst_62 : f32
    %cst_63 = arith.constant 0.000000e+00 : f32
    %146 = arith.cmpf ogt, %145, %cst_63 : f32
    %cst_64 = arith.constant 1.000000e+00 : f32
    %147 = arith.select %146, %145, %cst_64 : f32
    %148 = vector.broadcast %139 : f32 to vector<8x12xf32>
    %149 = arith.subf %135, %148 : vector<8x12xf32>
    %150 = vector.broadcast %147 : f32 to vector<8x12xf32>
    %151 = arith.divf %149, %150 : vector<8x12xf32>
    %152 = math.floor %151 : vector<8x12xf32>
    %cst_65 = arith.constant 0.000000e+00 : f32
    %cst_66 = arith.constant 1.500000e+01 : f32
    %153 = vector.broadcast %cst_65 : f32 to vector<8x12xf32>
    %154 = arith.maximumf %153, %152 : vector<8x12xf32>
    %155 = vector.broadcast %cst_66 : f32 to vector<8x12xf32>
    %156 = arith.minimumf %155, %154 : vector<8x12xf32>
    %157 = arith.fptosi %156 : vector<8x12xf32> to vector<8x12xi32>
    %158 = vector.shape_cast %157 : vector<8x12xi32> to vector<8x12x1xi32>
    %159 = vector.broadcast %158 : vector<8x12x1xi32> to vector<8x12x16xi32>
    %160 = arith.cmpi eq, %159, %62 : vector<8x12x16xi32>
    %161 = arith.extui %160 : vector<8x12x16xi1> to vector<8x12x16xi32>
    %162 = arith.sitofp %161 : vector<8x12x16xi32> to vector<8x12x16xf32>
    %cst_67 = arith.constant dense<0.000000e+00> : vector<12x16xf32>
    %163 = vector.multi_reduction <add>, %162, %cst_67 [0] : vector<8x12x16xf32> to vector<12x16xf32>
    %cst_68 = arith.constant dense<0.000000e+00> : vector<16xf32>
    %164 = vector.multi_reduction <add>, %163, %cst_68 [0] : vector<12x16xf32> to vector<16xf32>
    %165 = vector.shape_cast %164 : vector<16xf32> to vector<1x16xf32>
    %cst_69 = arith.constant 0.010416667 : f32
    %166 = vector.broadcast %cst_69 : f32 to vector<1x16xf32>
    %167 = arith.mulf %165, %166 : vector<1x16xf32>
    %168 = vector.extract_strided_slice %25 {offsets = [72, 0], sizes = [8, 16], strides = [1, 1]} : vector<96x16xf32> to vector<8x16xf32>
    %169 = vector.extract_strided_slice %25 {offsets = [80, 0], sizes = [12, 16], strides = [1, 1]} : vector<96x16xf32> to vector<12x16xf32>
    %cst_70 = arith.constant dense<0.000000e+00> : vector<8x12xf32>
    %170 = tpu.matmul %168, %169, %cst_70 {dimension_numbers = #tpu.dot_dimension_numbers<[1], [1], [0], [0], [0, 0, 1, 0], [], []>} : vector<8x16xf32>, vector<12x16xf32>, vector<8x12xf32> -> vector<8x12xf32>
    %171 = vector.shape_cast %170 : vector<8x12xf32> to vector<1x8x12xf32>
    %cst_71 = arith.constant dense<0x7F800000> : vector<1xf32>
    %172 = vector.multi_reduction <minimumf>, %171, %cst_71 [1, 2] : vector<1x8x12xf32> to vector<1xf32>
    %173 = vector.shape_cast %172 : vector<1xf32> to vector<1x1x1xf32>
    %174 = vector.extract %173[0, 0, 0] : f32 from vector<1x1x1xf32>
    %175 = vector.shape_cast %170 : vector<8x12xf32> to vector<1x8x12xf32>
    %cst_72 = arith.constant dense<0xFF800000> : vector<1xf32>
    %176 = vector.multi_reduction <maximumf>, %175, %cst_72 [1, 2] : vector<1x8x12xf32> to vector<1xf32>
    %177 = vector.shape_cast %176 : vector<1xf32> to vector<1x1x1xf32>
    %178 = vector.extract %177[0, 0, 0] : f32 from vector<1x1x1xf32>
    %179 = arith.subf %178, %174 : f32
    %cst_73 = arith.constant 1.600000e+01 : f32
    %180 = arith.divf %179, %cst_73 : f32
    %cst_74 = arith.constant 0.000000e+00 : f32
    %181 = arith.cmpf ogt, %180, %cst_74 : f32
    %cst_75 = arith.constant 1.000000e+00 : f32
    %182 = arith.select %181, %180, %cst_75 : f32
    %183 = vector.broadcast %174 : f32 to vector<8x12xf32>
    %184 = arith.subf %170, %183 : vector<8x12xf32>
    %185 = vector.broadcast %182 : f32 to vector<8x12xf32>
    %186 = arith.divf %184, %185 : vector<8x12xf32>
    %187 = math.floor %186 : vector<8x12xf32>
    %cst_76 = arith.constant 0.000000e+00 : f32
    %cst_77 = arith.constant 1.500000e+01 : f32
    %188 = vector.broadcast %cst_76 : f32 to vector<8x12xf32>
    %189 = arith.maximumf %188, %187 : vector<8x12xf32>
    %190 = vector.broadcast %cst_77 : f32 to vector<8x12xf32>
    %191 = arith.minimumf %190, %189 : vector<8x12xf32>
    %192 = arith.fptosi %191 : vector<8x12xf32> to vector<8x12xi32>
    %193 = vector.shape_cast %192 : vector<8x12xi32> to vector<8x12x1xi32>
    %194 = vector.broadcast %193 : vector<8x12x1xi32> to vector<8x12x16xi32>
    %195 = arith.cmpi eq, %194, %62 : vector<8x12x16xi32>
    %196 = arith.extui %195 : vector<8x12x16xi1> to vector<8x12x16xi32>
    %197 = arith.sitofp %196 : vector<8x12x16xi32> to vector<8x12x16xf32>
    %cst_78 = arith.constant dense<0.000000e+00> : vector<12x16xf32>
    %198 = vector.multi_reduction <add>, %197, %cst_78 [0] : vector<8x12x16xf32> to vector<12x16xf32>
    %cst_79 = arith.constant dense<0.000000e+00> : vector<16xf32>
    %199 = vector.multi_reduction <add>, %198, %cst_79 [0] : vector<12x16xf32> to vector<16xf32>
    %200 = vector.shape_cast %199 : vector<16xf32> to vector<1x16xf32>
    %cst_80 = arith.constant 0.010416667 : f32
    %201 = vector.broadcast %cst_80 : f32 to vector<1x16xf32>
    %202 = arith.mulf %200, %201 : vector<1x16xf32>
    %203 = tpu.concatenate %97, %132, %167, %202 in 0 : vector<1x16xf32>, vector<1x16xf32>, vector<1x16xf32>, vector<1x16xf32> -> vector<4x16xf32>
    %204 = tpu.concatenate %61, %203 in 1 : vector<4x16xf32>, vector<4x16xf32> -> vector<4x32xf32>
    %c168 = arith.constant 168 : index
    %c0_81 = arith.constant 0 : index
    %205 = vector.load %arg3[%c168, %c0_81] : memref<344x256xf32, #tpu.memory_space<vmem>>, vector<32x16xf32>
    %cst_82 = arith.constant dense<0.000000e+00> : vector<4x16xf32>
    %206 = tpu.matmul %204, %205, %cst_82 {dimension_numbers = #tpu.dot_dimension_numbers<[1], [0], [0], [1], [0, 0, 1, 1], [], []>} : vector<4x32xf32>, vector<32x16xf32>, vector<4x16xf32> -> vector<4x16xf32>
    %c200 = arith.constant 200 : index
    %c0_83 = arith.constant 0 : index
    %207 = vector.load %arg3[%c200, %c0_83] : memref<344x256xf32, #tpu.memory_space<vmem>>, vector<1x16xf32>
    %208 = vector.broadcast %207 : vector<1x16xf32> to vector<4x16xf32>
    %209 = arith.addf %206, %208 : vector<4x16xf32>
    %cst_84 = arith.constant 0.000000e+00 : f32
    %210 = vector.broadcast %cst_84 : f32 to vector<4x16xf32>
    %211 = arith.maximumf %209, %210 : vector<4x16xf32>
    %c208 = arith.constant 208 : index
    %c0_85 = arith.constant 0 : index
    %212 = vector.load %arg3[%c208, %c0_85] : memref<344x256xf32, #tpu.memory_space<vmem>>, vector<16x1xf32>
    %cst_86 = arith.constant dense<0.000000e+00> : vector<4x1xf32>
    %213 = tpu.matmul %211, %212, %cst_86 {dimension_numbers = #tpu.dot_dimension_numbers<[1], [0], [0], [1], [0, 0, 1, 1], [], []>} : vector<4x16xf32>, vector<16x1xf32>, vector<4x1xf32> -> vector<4x1xf32>
    %c224 = arith.constant 224 : index
    %c0_87 = arith.constant 0 : index
    %214 = vector.load %arg3[%c224, %c0_87] : memref<344x256xf32, #tpu.memory_space<vmem>>, vector<1x1xf32>
    %215 = vector.broadcast %214 : vector<1x1xf32> to vector<4x1xf32>
    %216 = arith.addf %213, %215 : vector<4x1xf32>
    %217 = arith.negf %216 : vector<4x1xf32>
    %218 = math.exp %217 : vector<4x1xf32>
    %cst_88 = arith.constant 1.000000e+00 : f32
    %219 = vector.broadcast %cst_88 : f32 to vector<4x1xf32>
    %220 = arith.addf %219, %218 : vector<4x1xf32>
    %221 = arith.divf %219, %220 : vector<4x1xf32>
    %222 = vector.shape_cast %221 : vector<4x1xf32> to vector<1x4x1xf32>
    %c0_89 = arith.constant 0 : index
    %c0_90 = arith.constant 0 : index
    %c0_91 = arith.constant 0 : index
    %223 = vector.load %arg4[%c0_89, %c0_90, %c0_91] : memref<1x4x1xf32, #tpu.memory_space<vmem>>, vector<1x4x1xf32>
    tpu.vector_store %arg4[%c0_89, %c0_90, %c0_91], %222 {strides = array<i32>} : memref<1x4x1xf32, #tpu.memory_space<vmem>>, vector<1x4x1xf32>,
    return
  }
  func.func @transform_0(%arg0: i32) -> (i32, i32, i32) {
    %c0_i32 = arith.constant 0 : i32
    %c0_i32_0 = arith.constant 0 : i32
    %c0_i32_1 = arith.constant 0 : i32
    return %arg0, %c0_i32, %c0_i32_0 : i32, i32, i32
  }
  func.func @transform_1(%arg0: i32) -> (i32, i32, i32) {
    %c0_i32 = arith.constant 0 : i32
    %c0_i32_0 = arith.constant 0 : i32
    %c0_i32_1 = arith.constant 0 : i32
    return %arg0, %c0_i32, %c0_i32_0 : i32, i32, i32
  }
  func.func @transform_2(%arg0: i32) -> (i32, i32) {
    %c0_i32 = arith.constant 0 : i32
    %c0_i32_0 = arith.constant 0 : i32
    %c0_i32_1 = arith.constant 0 : i32
    return %c0_i32, %c0_i32_0 : i32, i32
  }
  func.func @transform_3(%arg0: i32) -> (i32, i32, i32) {
    %c0_i32 = arith.constant 0 : i32
    %c0_i32_0 = arith.constant 0 : i32
    %c0_i32_1 = arith.constant 0 : i32
    return %arg0, %c0_i32, %c0_i32_0 : i32, i32, i32
  }
}

</mosaic_0001>

<bundles_post_ra>
// kernel: simgnn_batched_forward.1
= control target key start
LH: loop header
LB: loop body
LE: loop exit
PB: predicated region body
PF: predicated region fallthrough
CT: control target
= control target key end

     0   :  { %8 = vsyncpa [#allocation3], 0  ;;  %s4357_s12 = smov 0   ;;  %s5073_s0 = inlined_call_operand.vmem [shape: f32[4,96,96], index: 0, kind: input, shape index: {}]   ;;  %s5074_s1 = inlined_call_operand.vmem [shape: f32[4,96,8], index: 1, kind: input, shape index: {}]   ;;  %s5075_s2 = inlined_call_operand.hbm [shape: f32[344,256], index: 2, kind: input, shape index: {}]   ;;  %s5076_s3 = inlined_call_operand.vmem [shape: f32[4,4,1], index: 3, kind: output, shape index: {}]  }
   0x1 LB: > { %s3427_s13 = sadd.s32 4294967295, %s4323_s12   ;;  %p3429_p0 = scmp.ge.s32.totalorder %s4323_s12, 1  ;;  %s4323_s12 = sphi %s4357_s12, %s14_s12  }
   0x2   : > { %p118_p1 = scmp.lt.s32.totalorder %s4323_s12, 5  ;;  %s4325_s14 = smov [#allocation2]  }
   0x3   : > { %s130_s15 = sshll.u32 %s4325_s14, 4  ;;  %p4203_p3 = scmp.eq.s32.totalorder %s3427_s13, 0  ;;  %s131_s15 = int_to_ptr.vmem [resolvable:$true] %s130_s15 }
   0x4   : > { %p4365_p2 = pnand %p3429_p0, %p118_p1  ;;  %s4298_s17 = scalar_lea.vmem %s131_s15, 11008 }
   0x5   : > { %p4299_p7 = scmp.ne.s32.totalorder %s131_s15, %s4298_s17  ;;  %p4306_p10 = scmp.lt.s32.totalorder %s131_s15, %s131_s15 }
   0x6   : > { %p4199_p4 = pneg %p4365_p2  ;;  %p4307_p11 = scmp.lt.s32.totalorder %s4298_s17, %s4298_s17 }
   0x8   : > { %p4200_p5 = pnand %p4203_p3, %p4199_p4  ;;  %p4308_p12 = por %p4307_p11, %p4306_p10 }
   0xa   : > { %p4289_p6 = pneg %p4200_p5 }
   0xc   : > { %p4301_p8 = pnand %p4299_p7, %p4289_p6 }
   0xe   : > { %p4302_p9 = pneg %p4301_p8 }
  0x10   : > { %p4309_p13 = pnand %p4308_p12, %p4302_p9 }
  0x12   : > { %4312 = shalt.err (!%p4309_p13)
}
  0x13   : > { %s4326_s18 = smov 256   ;;  %s4327_s19 = smov 16  }
  0x14   : > { %4202 = dma.hbm_to_vmem [thread:$0]  (!%p4200_p5), %s5075_s2, 11008, %s131_s15, [#allocation3], %s4326_s18, %s4326_s18, %s4327_s19  }
  0x15   : > { %162 = sbr.rel (%p4365_p2) target bundleno = 3809 (0xee1), region = 32 }
  0x1a   : > { %4318 = dma.done.wait (%p4203_p3), [#allocation3], 11008  }
  0x1b   : > { %4320 = vsyncadd (%p4203_p3), [#allocation3], 4294956288  ;;  %p190_p0 = scmp.lt.s32.totalorder %s3427_s13, 3  ;;  %vm229_vm0 = vcmask 64512   ;;  %v228_v0 = vld [vmem:[#allocation2] sm:$0xff]  ;;  %vm392_vm1 = vcmask 785408  }
  0x1c   : > { %3823 = vmatprep.subr.mxu0 %v228_v0  ;;  %v569_v37 = vld [vmem:[#allocation2 + $0x50] sm:$0xff]  ;;  %v568_v38 = vld [vmem:[#allocation2 + $0x40] sm:$0xff]  ;;  %vm570_vm2 = vcmask 261120   ;;  %vm872_vm3 = vcmask 130048   ;;  %vm4329_vm4 = vmmov 0   ;;  %s4330_s29 = smov 32  }
  0x1d   : > { %s5079_s13 = smov (!%p190_p0, %s3427_s13), 3  ;;  %3824 = vmatpush3.msra.mxu0 %v228_v0  ;;  %v567_v39 = vld [vmem:[#allocation2 + $0x30] sm:$0xff]  ;;  %v566_v40 = vld [vmem:[#allocation2 + $0x20] sm:$0xff]  ;;  %s4331_s30 = smov 16   ;;  %vm1879_vm5 = vcmask 392192   ;;  %vm1881_vm6 = vcmask 523264  }
  0x1e   : > { %s4170_s22 = smul.u32 96, %s5079_s13  ;;  %3885 = vmatprep.subr.mxu0 %v569_v37  ;;  %v391_v41 = vld [vmem:[#allocation2 + $0x10] ss:$0 sm:$0xff]  ;;  %s4332_s4 = smov 48   ;;  %vm1883_vm7 = vcmask 654336   ;;  %vm1886_vm8 = vcmask 916480  }
  0x1f   : > { %s4333_s5 = smov 80   ;;  %s4334_s6 = smov 64   ;;  %vm2120_vm9 = vcmask 97280   ;;  %vm2307_vm14 = vcmask 125952  }
  0x20   : > { %s199_s25 = scalar_lea.vmem %s5074_s1, %s4170_s22  ;;  %s4404_s28 = scalar_lea.vmem %s5073_s0, %s4170_s22 }
  0x21   : > { %v216_v1 = vld [vmem:[%s199_s25] sm:$0xff]  ;;  %v217_v2 = vld [vmem:[%s199_s25 + $0x8] sm:$0xff]  ;;  %v218_v3 = vld [vmem:[%s199_s25 + $0x10] sm:$0xff]  ;;  %s4335_s7 = smov 112   ;;  %s4336_s8 = smov 96  }
  0x22   : > { %3825 = vmatprep.mubr.msk.f32.mxu0 %vm229_vm0, %v216_v1  ;;  %v219_v4 = vld [vmem:[%s199_s25 + $0x18] sm:$0xff]  ;;  %v220_v5 = vld [vmem:[%s199_s25 + $0x20] sm:$0xff]  ;;  %v221_v6 = vld [vmem:[%s199_s25 + $0x28] sm:$0xff]  ;;  %s3436_s27 = sshll.u32 %s5079_s13, 2 }
  0x23   : > { %3826 = vmatmul.mubr.msk.f32.vlgmr.msra.gmra.mxu0 %vm229_vm0, %v217_v2  ;;  %v222_v7 = vld [vmem:[%s199_s25 + $0x30] sm:$0xff]  ;;  %v223_v8 = vld [vmem:[%s199_s25 + $0x38] sm:$0xff]  ;;  %v224_v9 = vld [vmem:[%s199_s25 + $0x40] sm:$0xff] }
  0x24   : > { %3828 = vmatprep.mubr.msk.f32.mxu0 %vm229_vm0, %v218_v3  ;;  %v225_v10 = vld [vmem:[%s199_s25 + $0x48] sm:$0xff]  ;;  %v226_v11 = vld [vmem:[%s199_s25 + $0x50] sm:$0xff]  ;;  %v227_v12 = vld [vmem:[%s199_s25 + $0x58] sm:$0xff]  ;;  %3886 = vmatpush3.msra.mxu0 %v569_v37 }
  0x25   : > { %v4407_v13 = vld [vmem:[%s4404_s28] sm:$0xff]  ;;  %v4412_v26 = vld [vmem:[%s4404_s28 + $0x8] sm:$0xff]  ;;  %v4415_v27 = vld [vmem:[%s4404_s28 + $0x10] sm:$0xff]  ;;  %3887 = vmatprep.subr.mxu0 %v568_v38 }
  0x26   : > { %3867 = vmatprep.mubr.msk.f32.mxu1 %vm392_vm1, %v4407_v13  ;;  %v4422_v28 = vld [vmem:[%s4404_s28 + $0x18] sm:$0xff]  ;;  %v4425_v29 = vld [vmem:[%s4404_s28 + $0x20] sm:$0xff]  ;;  %v4432_v30 = vld [vmem:[%s4404_s28 + $0x28] sm:$0xff]  ;;  %3888 = vmatpush3.msra.mxu0 %v568_v38 }
  0x27   : > { %3829 = vmatmul.mubr.msk.f32.gmra.mxu0 %vm229_vm0, %v219_v4  ;;  %v4435_v31 = vld [vmem:[%s4404_s28 + $0x30] sm:$0xff]  ;;  %v4442_v32 = vld [vmem:[%s4404_s28 + $0x38] sm:$0xff]  ;;  %v4445_v33 = vld [vmem:[%s4404_s28 + $0x40] sm:$0xff]  ;;  %3889 = vmatprep.subr.mxu0 %v567_v39 }
  0x28   : > { %3831 = vmatprep.mubr.msk.f32.mxu0 %vm229_vm0, %v220_v5  ;;  %v4452_v34 = vld [vmem:[%s4404_s28 + $0x48] sm:$0xff]  ;;  %v4455_v35 = vld [vmem:[%s4404_s28 + $0x50] sm:$0xff]  ;;  %v4462_v36 = vld [vmem:[%s4404_s28 + $0x58] sm:$0xff]  ;;  %3890 = vmatpush3.msra.mxu0 %v567_v39 }
  0x29   : > { %3891 = vmatprep.subr.mxu0 %v566_v40  ;;  %v871_v38 = vld [vmem:[#allocation2 + $0x80] sm:$0xff]  ;;  %v870_v39 = vld [vmem:[#allocation2 + $0x70] sm:$0xff] }
  0x2a   : > { %3892 = vmatpush3.msra.mxu0 %v566_v40  ;;  %v732_v40 = vld [vmem:[#allocation2 + $0x60] ss:$0 sm:$0xff] }
  0x2b   : > { %3832 = vmatmul.mubr.msk.f32.gmra.mxu0 %vm229_vm0, %v221_v6  ;;  %3953 = vmatprep.subr.mxu0 %v871_v38 }
  0x2c   : > { %3834 = vmatprep.mubr.msk.f32.mxu0 %vm229_vm0, %v222_v7 }
  0x2f   : > { %3835 = vmatmul.mubr.msk.f32.gmra.mxu0 %vm229_vm0, %v223_v8 }
  0x30   : > { %3837 = vmatprep.mubr.msk.f32.mxu0 %vm229_vm0, %v224_v9 }
  0x33   : > { %3838 = vmatmul.mubr.msk.f32.gmra.mxu0 %vm229_vm0, %v225_v10 }
  0x34   : > { %3840 = vmatprep.mubr.msk.f32.mxu0 %vm229_vm0, %v226_v11 }
  0x37   : > { %3841 = vmatmul.mubr.msk.f32.gmra.mxu0 %vm229_vm0, %v227_v12 }
  0xe3   : > { %v3827_v14 = vpop.f32.mrf.mxu0 }
  0xe5   : > { %v332_v15 = vpop.f32.mrf.mxu0 }
  0xe7   : > { %v3830_v16 = vpop.f32.mrf.mxu0 }
  0xe9   : > { %v342_v17 = vpop.f32.mrf.mxu0 }
  0xeb   : > { %v3833_v18 = vpop.f32.mrf.mxu0 }
  0xed   : > { %v352_v19 = vpop.f32.mrf.mxu0 }
  0xef   : > { %v3836_v20 = vpop.f32.mrf.mxu0 }
  0xf1   : > { %v362_v21 = vpop.f32.mrf.mxu0 }
  0xf3   : > { %v3839_v22 = vpop.f32.mrf.mxu0 }
  0xf5   : > { %v372_v23 = vpop.f32.mrf.mxu0 }
  0xf7   : > { %v3842_v24 = vpop.f32.mrf.mxu0 }
  0xf8   : > { %3843 = vmatprep.subr.mxu1 %v3842_v24 }
  0xf9   : > { %v382_v25 = vpop.f32.mrf.mxu0  ;;  %3844 = vmatpush3.msra.mxu1 %v3842_v24 }
  0xfa   : > { %3845 = vmatprep.subr.mxu1 %v382_v25 }
  0xfb   : > { %3846 = vmatpush3.msra.mxu1 %v382_v25 }
  0xfc   : > { %3847 = vmatprep.subr.mxu1 %v3839_v22 }
  0xfd   : > { %3848 = vmatpush3.msra.mxu1 %v3839_v22 }
  0xfe   : > { %3849 = vmatprep.subr.mxu1 %v372_v23 }
  0xff   : > { %3850 = vmatpush3.msra.mxu1 %v372_v23 }
 0x100   : > { %3851 = vmatprep.subr.mxu1 %v3836_v20 }
 0x101   : > { %3852 = vmatpush3.msra.mxu1 %v3836_v20 }
 0x102   : > { %3853 = vmatprep.subr.mxu1 %v362_v21 }
 0x103   : > { %3854 = vmatpush3.msra.mxu1 %v362_v21 }
 0x104   : > { %3855 = vmatprep.subr.mxu1 %v3833_v18 }
 0x105   : > { %3856 = vmatpush3.msra.mxu1 %v3833_v18 }
 0x106   : > { %3857 = vmatprep.subr.mxu1 %v352_v19 }
 0x107   : > { %3858 = vmatpush3.msra.mxu1 %v352_v19 }
 0x108   : > { %3859 = vmatprep.subr.mxu1 %v3830_v16 }
 0x109   : > { %3860 = vmatpush3.msra.mxu1 %v3830_v16 }
 0x10a   : > { %3861 = vmatprep.subr.mxu1 %v342_v17 }
 0x10b   : > { %3862 = vmatpush3.msra.mxu1 %v342_v17 }
 0x10c   : > { %3863 = vmatprep.subr.mxu1 %v3827_v14 }
 0x10d   : > { %3864 = vmatpush3.msra.mxu1 %v3827_v14 }
 0x10e   : > { %3865 = vmatprep.subr.mxu1 %v332_v15 }
 0x10f   : > { %3866 = vmatpush3.msra.mxu1 %v332_v15 }
 0x110   : > { %3868 = vmatmul.mubr.msk.f32.vlgmr.msra.gmra.mxu1 %vm392_vm1, %v4412_v26 }
 0x111   : > { %3870 = vmatprep.mubr.msk.f32.mxu1 %vm392_vm1, %v4415_v27 }
 0x114   : > { %3871 = vmatmul.mubr.msk.f32.gmra.mxu1 %vm392_vm1, %v4422_v28 }
 0x115   : > { %3873 = vmatprep.mubr.msk.f32.mxu1 %vm392_vm1, %v4425_v29 }
 0x118   : > { %3874 = vmatmul.mubr.msk.f32.gmra.mxu1 %vm392_vm1, %v4432_v30 }
 0x119   : > { %3876 = vmatprep.mubr.msk.f32.mxu1 %vm392_vm1, %v4435_v31 }
 0x11c   : > { %3877 = vmatmul.mubr.msk.f32.gmra.mxu1 %vm392_vm1, %v4442_v32 }
 0x11d   : > { %3879 = vmatprep.mubr.msk.f32.mxu1 %vm392_vm1, %v4445_v33 }
 0x120   : > { %3880 = vmatmul.mubr.msk.f32.gmra.mxu1 %vm392_vm1, %v4452_v34 }
 0x121   : > { %3882 = vmatprep.mubr.msk.f32.mxu1 %vm392_vm1, %v4455_v35 }
 0x124   : > { %3883 = vmatmul.mubr.msk.f32.gmra.mxu1 %vm392_vm1, %v4462_v36 }
 0x125   : > { %3935 = vmatprep.mubr.msk.f32.mxu1 %vm392_vm1, %v4407_v13 }
 0x1d0   : > { %v3869_v42 = vpop.f32.mrf.mxu1 }
 0x1d1   : > { %v501_v43 = vadd.f32 %v3869_v42, %v391_v41 }
 0x1d2   : > { %v495_v44 = vpop.f32.mrf.mxu1 }
 0x1d3   : > { %v496_v45 = vadd.f32 %v495_v44, %v391_v41  ;;  %v555_v48 = vmax.f32 %v501_v43, 0.0 }
 0x1d4   : > { %v3872_v46 = vpop.f32.mrf.mxu1 }
 0x1d5   : > { %v554_v47 = vmax.f32 %v496_v45, 0.0  ;;  %v511_v49 = vadd.f32 %v3872_v46, %v391_v41 }
 0x1d6   : > { %v505_v50 = vpop.f32.mrf.mxu1 }
 0x1d7   : > { %v506_v51 = vadd.f32 %v505_v50, %v391_v41  ;;  %3893 = vmatprep.mubr.msk.f32.mxu0 %vm570_vm2, %v554_v47  ;;  %v557_v54 = vmax.f32 %v511_v49, 0.0 }
 0x1d8   : > { %v3875_v52 = vpop.f32.mrf.mxu1  ;;  %3894 = vmatmul.mubr.msk.f32.vlgmr.msra.gmra.mxu0 %vm570_vm2, %v555_v48 }
 0x1d9   : > { %v556_v53 = vmax.f32 %v506_v51, 0.0  ;;  %v521_v55 = vadd.f32 %v3875_v52, %v391_v41  ;;  %3954 = vmatpush3.msra.mxu0 %v871_v38 }
 0x1da   : > { %v515_v56 = vpop.f32.mrf.mxu1  ;;  %3955 = vmatprep.subr.mxu0 %v870_v39 }
 0x1db   : > { %v516_v57 = vadd.f32 %v515_v56, %v391_v41  ;;  %3896 = vmatprep.mubr.msk.f32.mxu0 %vm570_vm2, %v556_v53  ;;  %v559_v60 = vmax.f32 %v521_v55, 0.0  ;;  %3956 = vmatpush3.msra.mxu0 %v870_v39 }
 0x1dc   : > { %v3878_v58 = vpop.f32.mrf.mxu1  ;;  %3897 = vmatmul.mubr.msk.f32.gmra.mxu0 %vm570_vm2, %v557_v54 }
 0x1dd   : > { %v558_v59 = vmax.f32 %v516_v57, 0.0  ;;  %v531_v61 = vadd.f32 %v3878_v58, %v391_v41 }
 0x1de   : > { %v525_v62 = vpop.f32.mrf.mxu1 }
 0x1df   : > { %v526_v63 = vadd.f32 %v525_v62, %v391_v41  ;;  %3899 = vmatprep.mubr.msk.f32.mxu0 %vm570_vm2, %v558_v59  ;;  %v561_v2 = vmax.f32 %v531_v61, 0.0 }
 0x1e0   : > { %v3881_v0 = vpop.f32.mrf.mxu1  ;;  %3900 = vmatmul.mubr.msk.f32.gmra.mxu0 %vm570_vm2, %v559_v60 }
 0x1e1   : > { %v560_v1 = vmax.f32 %v526_v63, 0.0  ;;  %v541_v3 = vadd.f32 %v3881_v0, %v391_v41 }
 0x1e2   : > { %v535_v4 = vpop.f32.mrf.mxu1 }
 0x1e3   : > { %v536_v5 = vadd.f32 %v535_v4, %v391_v41  ;;  %3902 = vmatprep.mubr.msk.f32.mxu0 %vm570_vm2, %v560_v1  ;;  %v563_v8 = vmax.f32 %v541_v3, 0.0 }
 0x1e4   : > { %v3884_v6 = vpop.f32.mrf.mxu1  ;;  %3903 = vmatmul.mubr.msk.f32.gmra.mxu0 %vm570_vm2, %v561_v2 }
 0x1e5   : > { %v562_v7 = vmax.f32 %v536_v5, 0.0  ;;  %v551_v9 = vadd.f32 %v3884_v6, %v391_v41 }
 0x1e6   : > { %v545_v10 = vpop.f32.mrf.mxu1 }
 0x1e7   : > { %v546_v11 = vadd.f32 %v545_v10, %v391_v41  ;;  %3905 = vmatprep.mubr.msk.f32.mxu0 %vm570_vm2, %v562_v7  ;;  %v565_v14 = vmax.f32 %v551_v9, 0.0 }
 0x1e8   : > { %3906 = vmatmul.mubr.msk.f32.gmra.mxu0 %vm570_vm2, %v563_v8 }
 0x1e9   : > { %v564_v12 = vmax.f32 %v546_v11, 0.0 }
 0x1eb   : > { %3908 = vmatprep.mubr.msk.f32.mxu0 %vm570_vm2, %v564_v12 }
 0x1ec   : > { %3909 = vmatmul.mubr.msk.f32.gmra.mxu0 %vm570_vm2, %v565_v14 }
 0x298   : > { %v3895_v15 = vpop.f32.mrf.mxu0 }
 0x29a   : > { %v673_v16 = vpop.f32.mrf.mxu0 }
 0x29c   : > { %v3898_v17 = vpop.f32.mrf.mxu0 }
 0x29e   : > { %v683_v18 = vpop.f32.mrf.mxu0 }
 0x2a0   : > { %v3901_v19 = vpop.f32.mrf.mxu0 }
 0x2a2   : > { %v693_v20 = vpop.f32.mrf.mxu0 }
 0x2a4   : > { %v3904_v21 = vpop.f32.mrf.mxu0 }
 0x2a6   : > { %v703_v22 = vpop.f32.mrf.mxu0 }
 0x2a8   : > { %v3907_v23 = vpop.f32.mrf.mxu0 }
 0x2aa   : > { %v713_v24 = vpop.f32.mrf.mxu0 }
 0x2ac   : > { %v3910_v25 = vpop.f32.mrf.mxu0 }
 0x2ad   : > { %3911 = vmatprep.subr.mxu1 %v3910_v25 }
 0x2ae   : > { %v723_v37 = vpop.f32.mrf.mxu0  ;;  %3912 = vmatpush3.msra.mxu1 %v3910_v25 }
 0x2af   : > { %3913 = vmatprep.subr.mxu1 %v723_v37 }
 0x2b0   : > { %3914 = vmatpush3.msra.mxu1 %v723_v37 }
 0x2b1   : > { %3915 = vmatprep.subr.mxu1 %v3907_v23 }
 0x2b2   : > { %3916 = vmatpush3.msra.mxu1 %v3907_v23 }
 0x2b3   : > { %3917 = vmatprep.subr.mxu1 %v713_v24 }
 0x2b4   : > { %3918 = vmatpush3.msra.mxu1 %v713_v24 }
 0x2b5   : > { %3919 = vmatprep.subr.mxu1 %v3904_v21 }
 0x2b6   : > { %3920 = vmatpush3.msra.mxu1 %v3904_v21 }
 0x2b7   : > { %3921 = vmatprep.subr.mxu1 %v703_v22 }
 0x2b8   : > { %3922 = vmatpush3.msra.mxu1 %v703_v22 }
 0x2b9   : > { %3923 = vmatprep.subr.mxu1 %v3901_v19 }
 0x2ba   : > { %3924 = vmatpush3.msra.mxu1 %v3901_v19 }
 0x2bb   : > { %3925 = vmatprep.subr.mxu1 %v693_v20 }
 0x2bc   : > { %3926 = vmatpush3.msra.mxu1 %v693_v20 }
 0x2bd   : > { %3927 = vmatprep.subr.mxu1 %v3898_v17 }
 0x2be   : > { %3928 = vmatpush3.msra.mxu1 %v3898_v17 }
 0x2bf   : > { %3929 = vmatprep.subr.mxu1 %v683_v18 }
 0x2c0   : > { %3930 = vmatpush3.msra.mxu1 %v683_v18 }
 0x2c1   : > { %3931 = vmatprep.subr.mxu1 %v3895_v15 }
 0x2c2   : > { %3932 = vmatpush3.msra.mxu1 %v3895_v15 }
 0x2c3   : > { %3933 = vmatprep.subr.mxu1 %v673_v16 }
 0x2c4   : > { %3934 = vmatpush3.msra.mxu1 %v673_v16 }
 0x2c5   : > { %3936 = vmatmul.mubr.msk.f32.vlgmr.msra.gmra.mxu1 %vm392_vm1, %v4412_v26 }
 0x2c6   : > { %3938 = vmatprep.mubr.msk.f32.mxu1 %vm392_vm1, %v4415_v27 }
 0x2c9   : > { %3939 = vmatmul.mubr.msk.f32.gmra.mxu1 %vm392_vm1, %v4422_v28 }
 0x2ca   : > { %3941 = vmatprep.mubr.msk.f32.mxu1 %vm392_vm1, %v4425_v29 }
 0x2cd   : > { %3942 = vmatmul.mubr.msk.f32.gmra.mxu1 %vm392_vm1, %v4432_v30 }
 0x2ce   : > { %3944 = vmatprep.mubr.msk.f32.mxu1 %vm392_vm1, %v4435_v31 }
 0x2d1   : > { %3945 = vmatmul.mubr.msk.f32.gmra.mxu1 %vm392_vm1, %v4442_v32 }
 0x2d2   : > { %3947 = vmatprep.mubr.msk.f32.mxu1 %vm392_vm1, %v4445_v33 }
 0x2d5   : > { %3948 = vmatmul.mubr.msk.f32.gmra.mxu1 %vm392_vm1, %v4452_v34 }
 0x2d6   : > { %3950 = vmatprep.mubr.msk.f32.mxu1 %vm392_vm1, %v4455_v35 }
 0x2d9   : > { %3951 = vmatmul.mubr.msk.f32.gmra.mxu1 %vm392_vm1, %v4462_v36 }
 0x2da   : > { %3999 = vmatprep.mubr.msk.f32.mxu1 %vm392_vm1, %v4407_v13 }
 0x385   : > { %v3937_v41 = vpop.f32.mrf.mxu1 }
 0x386   : > { %v805_v42 = vadd.f32 %v3937_v41, %v732_v40 }
 0x387   : > { %v799_v43 = vpop.f32.mrf.mxu1 }
 0x388   : > { %v800_v44 = vadd.f32 %v799_v43, %v732_v40  ;;  %v859_v47 = vmax.f32 %v805_v42, 0.0 }
 0x389   : > { %v3940_v45 = vpop.f32.mrf.mxu1 }
 0x38a   : > { %v858_v46 = vmax.f32 %v800_v44, 0.0  ;;  %v815_v48 = vadd.f32 %v3940_v45, %v732_v40 }
 0x38b   : > { %v809_v49 = vpop.f32.mrf.mxu1 }
 0x38c   : > { %v810_v50 = vadd.f32 %v809_v49, %v732_v40  ;;  %3957 = vmatprep.mubr.msk.f32.mxu0 %vm872_vm3, %v858_v46  ;;  %v861_v52 = vmax.f32 %v815_v48, 0.0 }
 0x38d   : > { %v3943_v13 = vpop.f32.mrf.mxu1  ;;  %3958 = vmatmul.mubr.msk.f32.vlgmr.msra.gmra.mxu0 %vm872_vm3, %v859_v47 }
 0x38e   : > { %v860_v51 = vmax.f32 %v810_v50, 0.0  ;;  %v825_v53 = vadd.f32 %v3943_v13, %v732_v40 }
 0x38f   : > { %v819_v54 = vpop.f32.mrf.mxu1 }
 0x390   : > { %v820_v55 = vadd.f32 %v819_v54, %v732_v40  ;;  %3960 = vmatprep.mubr.msk.f32.mxu0 %vm872_vm3, %v860_v51  ;;  %v863_v58 = vmax.f32 %v825_v53, 0.0  ;;  %v4328_v51 = vmov 0.0  }
 0x391   : > { %v3946_v56 = vpop.f32.mrf.mxu1  ;;  %3961 = vmatmul.mubr.msk.f32.gmra.mxu0 %vm872_vm3, %v861_v52 }
 0x392   : > { %v862_v57 = vmax.f32 %v820_v55, 0.0  ;;  %v835_v59 = vadd.f32 %v3946_v56, %v732_v40 }
 0x393   : > { %v829_v60 = vpop.f32.mrf.mxu1 }
 0x394   : > { %v830_v61 = vadd.f32 %v829_v60, %v732_v40  ;;  %3963 = vmatprep.mubr.msk.f32.mxu0 %vm872_vm3, %v862_v57  ;;  %v865_v0 = vmax.f32 %v835_v59, 0.0 }
 0x395   : > { %v3949_v62 = vpop.f32.mrf.mxu1  ;;  %3964 = vmatmul.mubr.msk.f32.gmra.mxu0 %vm872_vm3, %v863_v58 }
 0x396   : > { %v864_v63 = vmax.f32 %v830_v61, 0.0  ;;  %v845_v1 = vadd.f32 %v3949_v62, %v732_v40 }
 0x397   : > { %v839_v2 = vpop.f32.mrf.mxu1 }
 0x398   : > { %v840_v3 = vadd.f32 %v839_v2, %v732_v40  ;;  %3966 = vmatprep.mubr.msk.f32.mxu0 %vm872_vm3, %v864_v63  ;;  %v867_v6 = vmax.f32 %v845_v1, 0.0  ;;  %v1398_v1 = vld [vmem:[#allocation2 + $0x1f0] sm:$0xff] }
 0x399   : > { %v3952_v4 = vpop.f32.mrf.mxu1  ;;  %3967 = vmatmul.mubr.msk.f32.gmra.mxu0 %vm872_vm3, %v865_v0  ;;  %v1323_v0 = vld [vmem:[#allocation2 + $0x1d0] sm:$0xff] }
 0x39a   : > { %v866_v5 = vmax.f32 %v840_v3, 0.0  ;;  %v855_v7 = vadd.f32 %v3952_v4, %v732_v40 }
 0x39b   : > { %v849_v8 = vpop.f32.mrf.mxu1 }
 0x39c   : > { %v850_v9 = vadd.f32 %v849_v8, %v732_v40  ;;  %3969 = vmatprep.mubr.msk.f32.mxu0 %vm872_vm3, %v866_v5  ;;  %v869_v11 = vmax.f32 %v855_v7, 0.0  ;;  %v1399_v5 = vld [vmem:[#allocation2 + $0x200] sm:$0xff]  ;;  %v1402_v8 = vld [vmem:[#allocation2 + $0x230] sm:$0xff] }
 0x39d   : > { %3970 = vmatmul.mubr.msk.f32.gmra.mxu0 %vm872_vm3, %v867_v6  ;;  %v1400_v6 = vld [vmem:[#allocation2 + $0x210] sm:$0xff]  ;;  %v1401_v7 = vld [vmem:[#allocation2 + $0x220] sm:$0xff] }
 0x39e   : > { %v868_v10 = vmax.f32 %v850_v9, 0.0  ;;  %v1403_v9 = vld [vmem:[#allocation2 + $0x240] sm:$0xff] }
 0x3a0   : > { %3972 = vmatprep.mubr.msk.f32.mxu0 %vm872_vm3, %v868_v10  ;;  %v1404_v10 = vld [vmem:[#allocation2 + $0x250] sm:$0xff] }
 0x3a1   : > { %3973 = vmatmul.mubr.msk.f32.gmra.mxu0 %vm872_vm3, %v869_v11  ;;  %v1405_v11 = vld [vmem:[#allocation2 + $0x260] sm:$0xff] }
 0x44d   : > { %v3959_v12 = vpop.f32.mrf.mxu0 }
 0x44f   : > { %v975_v14 = vpop.f32.mrf.mxu0 }
 0x451   : > { %v3962_v15 = vpop.f32.mrf.mxu0 }
 0x453   : > { %v985_v16 = vpop.f32.mrf.mxu0 }
 0x455   : > { %v3965_v17 = vpop.f32.mrf.mxu0 }
 0x457   : > { %v995_v18 = vpop.f32.mrf.mxu0 }
 0x459   : > { %v3968_v19 = vpop.f32.mrf.mxu0 }
 0x45b   : > { %v1005_v20 = vpop.f32.mrf.mxu0 }
 0x45d   : > { %v3971_v21 = vpop.f32.mrf.mxu0 }
 0x45f   : > { %v1015_v22 = vpop.f32.mrf.mxu0 }
 0x461   : > { %v3974_v23 = vpop.f32.mrf.mxu0 }
 0x462   : > { %3975 = vmatprep.subr.mxu1 %v3974_v23 }
 0x463   : > { %v1025_v24 = vpop.f32.mrf.mxu0  ;;  %3976 = vmatpush3.msra.mxu1 %v3974_v23 }
 0x464   : > { %3977 = vmatprep.subr.mxu1 %v1025_v24 }
 0x465   : > { %3978 = vmatpush3.msra.mxu1 %v1025_v24 }
 0x466   : > { %3979 = vmatprep.subr.mxu1 %v3971_v21 }
 0x467   : > { %3980 = vmatpush3.msra.mxu1 %v3971_v21 }
 0x468   : > { %3981 = vmatprep.subr.mxu1 %v1015_v22 }
 0x469   : > { %3982 = vmatpush3.msra.mxu1 %v1015_v22 }
 0x46a   : > { %3983 = vmatprep.subr.mxu1 %v3968_v19 }
 0x46b   : > { %3984 = vmatpush3.msra.mxu1 %v3968_v19 }
 0x46c   : > { %3985 = vmatprep.subr.mxu1 %v1005_v20 }
 0x46d   : > { %3986 = vmatpush3.msra.mxu1 %v1005_v20 }
 0x46e   : > { %3987 = vmatprep.subr.mxu1 %v3965_v17 }
 0x46f   : > { %3988 = vmatpush3.msra.mxu1 %v3965_v17 }
 0x470   : > { %3989 = vmatprep.subr.mxu1 %v995_v18 }
 0x471   : > { %3990 = vmatpush3.msra.mxu1 %v995_v18 }
 0x472   : > { %3991 = vmatprep.subr.mxu1 %v3962_v15 }
 0x473   : > { %3992 = vmatpush3.msra.mxu1 %v3962_v15  ;;  %v1408_v15 = vld [vmem:[#allocation2 + $0x290] sm:$0xff] }
 0x474   : > { %3993 = vmatprep.subr.mxu1 %v985_v16 }
 0x475   : > { %3994 = vmatpush3.msra.mxu1 %v985_v16  ;;  %v1409_v16 = vld [vmem:[#allocation2 + $0x2a0] sm:$0xff] }
 0x476   : > { %3995 = vmatprep.subr.mxu1 %v3959_v12 }
 0x477   : > { %3996 = vmatpush3.msra.mxu1 %v3959_v12  ;;  %v1406_v12 = vld [vmem:[#allocation2 + $0x270] sm:$0xff] }
 0x478   : > { %3997 = vmatprep.subr.mxu1 %v975_v14 }
 0x479   : > { %3998 = vmatpush3.msra.mxu1 %v975_v14  ;;  %v1407_v14 = vld [vmem:[#allocation2 + $0x280] sm:$0xff] }
 0x47a   : > { %4000 = vmatmul.mubr.msk.f32.vlgmr.msra.gmra.mxu1 %vm392_vm1, %v4412_v26  ;;  %v1161_v26 = vld [vmem:[#allocation2 + $0xb0] sm:$0xff]  ;;  %4039 = vmatprep.subr.mxu1 %v4328_v51 }
 0x47b   : > { %4002 = vmatprep.mubr.msk.f32.mxu1 %vm392_vm1, %v4415_v27  ;;  %4017 = vmatprep.subr.mxu0 %v1161_v26  ;;  %v1160_v27 = vld [vmem:[#allocation2 + $0xa0] sm:$0xff] }
 0x47c   : > { %4018 = vmatpush3.msra.mxu0 %v1161_v26 }
 0x47d   : > { %4019 = vmatprep.subr.mxu0 %v1160_v27 }
 0x47e   : > { %4003 = vmatmul.mubr.msk.f32.gmra.mxu1 %vm392_vm1, %v4422_v28  ;;  %4020 = vmatpush3.msra.mxu0 %v1160_v27 }
 0x47f   : > { %4005 = vmatprep.mubr.msk.f32.mxu1 %vm392_vm1, %v4425_v29  ;;  %v1034_v29 = vld [vmem:[#allocation2 + $0x90] ss:$0 sm:$0xff] }
 0x482   : > { %4006 = vmatmul.mubr.msk.f32.gmra.mxu1 %vm392_vm1, %v4432_v30 }
 0x483   : > { %4008 = vmatprep.mubr.msk.f32.mxu1 %vm392_vm1, %v4435_v31 }
 0x486   : > { %4009 = vmatmul.mubr.msk.f32.gmra.mxu1 %vm392_vm1, %v4442_v32 }
 0x487   : > { %4011 = vmatprep.mubr.msk.f32.mxu1 %vm392_vm1, %v4445_v33 }
 0x48a   : > { %4012 = vmatmul.mubr.msk.f32.gmra.mxu1 %vm392_vm1, %v4452_v34 }
 0x48b   : > { %4014 = vmatprep.mubr.msk.f32.mxu1 %vm392_vm1, %v4455_v35 }
 0x48e   : > { %4015 = vmatmul.mubr.msk.f32.gmra.mxu1 %vm392_vm1, %v4462_v36 }
 0x48f   : > { %4063 = vmatprep.mubr.msk.f32.mxu1 %vm4329_vm4, %v4328_v51 }
 0x53a   : > { %v4001_v28 = vpop.f32.mrf.mxu1 }
 0x53b   : > { %v4540_v32 = vadd.f32 %v4001_v28, %v1034_v29 }
 0x53c   : > { %v1101_v30 = vpop.f32.mrf.mxu1 }
 0x53d   : > { %v4538_v31 = vadd.f32 %v1101_v30, %v1034_v29 }
 0x53e   : > { %v4004_v33 = vpop.f32.mrf.mxu1 }
 0x53f   : > { %4021 = vmatprep.mubr.msk.f32.mxu0 %vm872_vm3, %v4538_v31  ;;  %v4548_v36 = vadd.f32 %v4004_v33, %v1034_v29 }
 0x540   : > { %v1111_v34 = vpop.f32.mrf.mxu1  ;;  %4022 = vmatmul.mubr.msk.f32.vlgmr.msra.gmra.mxu0 %vm872_vm3, %v4540_v32 }
 0x541   : > { %v4546_v35 = vadd.f32 %v1111_v34, %v1034_v29 }
 0x542   : > { %v4007_v25 = vpop.f32.mrf.mxu1 }
 0x543   : > { %4024 = vmatprep.mubr.msk.f32.mxu0 %vm872_vm3, %v4546_v35  ;;  %v4556_v39 = vadd.f32 %v4007_v25, %v1034_v29 }
 0x544   : > { %v1121_v37 = vpop.f32.mrf.mxu1  ;;  %4025 = vmatmul.mubr.msk.f32.gmra.mxu0 %vm872_vm3, %v4548_v36 }
 0x545   : > { %v4554_v38 = vadd.f32 %v1121_v37, %v1034_v29 }
 0x546   : > { %v4010_v40 = vpop.f32.mrf.mxu1 }
 0x547   : > { %4027 = vmatprep.mubr.msk.f32.mxu0 %vm872_vm3, %v4554_v38  ;;  %v4564_v43 = vadd.f32 %v4010_v40, %v1034_v29 }
 0x548   : > { %v1131_v41 = vpop.f32.mrf.mxu1  ;;  %4028 = vmatmul.mubr.msk.f32.gmra.mxu0 %vm872_vm3, %v4556_v39 }
 0x549   : > { %v4562_v42 = vadd.f32 %v1131_v41, %v1034_v29 }
 0x54a   : > { %v4013_v44 = vpop.f32.mrf.mxu1 }
 0x54b   : > { %4030 = vmatprep.mubr.msk.f32.mxu0 %vm872_vm3, %v4562_v42  ;;  %v4572_v47 = vadd.f32 %v4013_v44, %v1034_v29 }
 0x54c   : > { %v1141_v45 = vpop.f32.mrf.mxu1  ;;  %4031 = vmatmul.mubr.msk.f32.gmra.mxu0 %vm872_vm3, %v4564_v43 }
 0x54d   : > { %v4570_v46 = vadd.f32 %v1141_v45, %v1034_v29 }
 0x54e   : > { %v4016_v48 = vpop.f32.mrf.mxu1 }
 0x54f   : > { %4033 = vmatprep.mubr.msk.f32.mxu0 %vm872_vm3, %v4570_v46  ;;  %v4580_v13 = vadd.f32 %v4016_v48, %v1034_v29 }
 0x550   : > { %v1151_v49 = vpop.f32.mrf.mxu1  ;;  %4034 = vmatmul.mubr.msk.f32.gmra.mxu0 %vm872_vm3, %v4572_v47 }
 0x551   : > { %v4578_v50 = vadd.f32 %v1151_v49, %v1034_v29 }
 0x553   : > { %4036 = vmatprep.mubr.msk.f32.mxu0 %vm872_vm3, %v4578_v50 }
 0x554   : > { %4037 = vmatmul.mubr.msk.f32.gmra.mxu0 %vm872_vm3, %v4580_v13 }
 0x555   : > { %4068 = vmatprep.mubr.msk.f32.mxu0 %vm229_vm0, %v1398_v1  ;;  %v1780_v1 = vld [vmem:[#allocation2 + $0xd8] sm:$0xff] }
 0x600   : > { %v4023_v52 = vpop.f32.mrf.mxu0 }
 0x602   : > { %v1264_v53 = vpop.f32.mrf.mxu0 }
 0x604   : > { %v4026_v54 = vpop.f32.mrf.mxu0 }
 0x606   : > { %v1274_v55 = vpop.f32.mrf.mxu0 }
 0x608   : > { %v4029_v56 = vpop.f32.mrf.mxu0 }
 0x60a   : > { %v1284_v57 = vpop.f32.mrf.mxu0 }
 0x60c   : > { %v4032_v58 = vpop.f32.mrf.mxu0 }
 0x60e   : > { %v1294_v59 = vpop.f32.mrf.mxu0 }
 0x610   : > { %v4035_v60 = vpop.f32.mrf.mxu0 }
 0x612   : > { %v1304_v61 = vpop.f32.mrf.mxu0 }
 0x614   : > { %v4038_v62 = vpop.f32.mrf.mxu0 }
 0x615   : > { %4040 = vmatpush3.msra.mxu1 %v4038_v62 }
 0x616   : > { %v1314_v63 = vpop.f32.mrf.mxu0  ;;  %4041 = vmatprep.subr.mxu1 %v4328_v51 }
 0x617   : > { %4042 = vmatpush3.msra.mxu1 %v1314_v63 }
 0x618   : > { %4043 = vmatprep.subr.mxu1 %v4328_v51 }
 0x619   : > { %4044 = vmatpush3.msra.mxu1 %v4035_v60 }
 0x61a   : > { %4045 = vmatprep.subr.mxu1 %v4328_v51 }
 0x61b   : > { %4046 = vmatpush3.msra.mxu1 %v1304_v61 }
 0x61c   : > { %4047 = vmatprep.subr.mxu1 %v4328_v51 }
 0x61d   : > { %4048 = vmatpush3.msra.mxu1 %v4032_v58 }
 0x61e   : > { %4049 = vmatprep.subr.mxu1 %v4328_v51 }
 0x61f   : > { %4050 = vmatpush3.msra.mxu1 %v1294_v59 }
 0x620   : > { %4051 = vmatprep.subr.mxu1 %v4328_v51 }
 0x621   : > { %4052 = vmatpush3.msra.mxu1 %v4029_v56 }
 0x622   : > { %4053 = vmatprep.subr.mxu1 %v4328_v51 }
 0x623   : > { %4054 = vmatpush3.msra.mxu1 %v1284_v57 }
 0x624   : > { %4055 = vmatprep.subr.mxu1 %v4328_v51 }
 0x625   : > { %4056 = vmatpush3.msra.mxu1 %v4026_v54 }
 0x626   : > { %4057 = vmatprep.subr.mxu1 %v4328_v51 }
 0x627   : > { %4058 = vmatpush3.msra.mxu1 %v1274_v55 }
 0x628   : > { %4059 = vmatprep.subr.mxu1 %v4328_v51 }
 0x629   : > { %4060 = vmatpush3.msra.mxu1 %v4023_v52 }
 0x62a   : > { %4061 = vmatprep.subr.mxu1 %v4328_v51 }
 0x62b   : > { %4062 = vmatpush3.msra.mxu1 %v1264_v53 }
 0x62c   : > { %4064 = vmatmul.mubr.msk.f32.vlgmr.msra.gmra.mxu1 %vm392_vm1, %v1323_v0  ;;  %4086 = vmatprep.subr.mxu1 %v4328_v51 }
 0x62d   : > { %4110 = vmatprep.mubr.msk.f32.mxu1 %vm4329_vm4, %v4328_v51 }
 0x6ec   : > { %v1393_v2 = vpop.f32.mrf.mxu1 }
 0x6ed   : > { %4225 = vtanh.f32 %v1393_v2 }
 0x6ee   : > { %v4065_v3 = vpop.f32.mrf.mxu1 }
 0x6fa   : > { %v4226_v4 = vpop.eup %4225 }
 0x6fb   : > { %4066 = vmatprep.subr.mxu0 %v4226_v4 }
 0x6fc   : > { %4067 = vmatpush3.msra.mxu0 %v4226_v4 }
 0x6fd   : > { %4069 = vmatmul.mubr.msk.f32.vlgmr.msra.gmra.mxu0 %vm229_vm0, %v1399_v5  ;;  %1813 = vmatprep.subr.mxu0 %v1780_v1 }
 0x6fe   : > { %4071 = vmatprep.mubr.msk.f32.mxu0 %vm229_vm0, %v1400_v6 }
 0x701   : > { %4072 = vmatmul.mubr.msk.f32.gmra.mxu0 %vm229_vm0, %v1401_v7 }
 0x702   : > { %4074 = vmatprep.mubr.msk.f32.mxu0 %vm229_vm0, %v1402_v8 }
 0x705   : > { %4075 = vmatmul.mubr.msk.f32.gmra.mxu0 %vm229_vm0, %v1403_v9 }
 0x706   : > { %4077 = vmatprep.mubr.msk.f32.mxu0 %vm229_vm0, %v1404_v10 }
 0x709   : > { %4078 = vmatmul.mubr.msk.f32.gmra.mxu0 %vm229_vm0, %v1405_v11 }
 0x70a   : > { %4080 = vmatprep.mubr.msk.f32.mxu0 %vm229_vm0, %v1406_v12 }
 0x70d   : > { %4081 = vmatmul.mubr.msk.f32.gmra.mxu0 %vm229_vm0, %v1407_v14 }
 0x70e   : > { %4083 = vmatprep.mubr.msk.f32.mxu0 %vm229_vm0, %v1408_v15 }
 0x711   : > { %4084 = vmatmul.mubr.msk.f32.gmra.mxu0 %vm229_vm0, %v1409_v16 }
 0x712   : > { %1849 = vmatprep.mubr.f32.mxu0 %v4328_v51 }
 0x7bd   : > { %v4070_v17 = vpop.f32.mrf.mxu0 }
 0x7be   : > { %v1572_v61 = vmul.f32 %v4070_v17, %v4540_v32 }
 0x7bf   : > { %v1512_v18 = vpop.f32.mrf.mxu0 }
 0x7c0   : > { %v1571_v57 = vmul.f32 %v1512_v18, %v4538_v31  ;;  %v1586_v0 = vsel %vm872_vm3, %v1572_v61, 0.0 }
 0x7c1   : > { %v4073_v19 = vpop.f32.mrf.mxu0 }
 0x7c2   : > { %v1574_v58 = vmul.f32 %v4073_v19, %v4548_v36  ;;  %v1583_v62 = vsel %vm872_vm3, %v1571_v57, 0.0 }
 0x7c3   : > { %v1522_v20 = vpop.f32.mrf.mxu0 }
 0x7c4   : > { %v1573_v53 = vmul.f32 %v1522_v20, %v4546_v35  ;;  %v1592_v63 = vsel %vm872_vm3, %v1574_v58, 0.0 }
 0x7c5   : > { %v4076_v21 = vpop.f32.mrf.mxu0 }
 0x7c6   : > { %v1576_v54 = vmul.f32 %v4076_v21, %v4556_v39  ;;  %v1589_v59 = vsel %vm872_vm3, %v1573_v53, 0.0 }
 0x7c7   : > { %v1532_v22 = vpop.f32.mrf.mxu0 }
 0x7c8   : > { %v1575_v45 = vmul.f32 %v1532_v22, %v4554_v38  ;;  %v1598_v60 = vsel %vm872_vm3, %v1576_v54, 0.0 }
 0x7c9   : > { %v4079_v23 = vpop.f32.mrf.mxu0 }
 0x7ca   : > { %v1578_v48 = vmul.f32 %v4079_v23, %v4564_v43  ;;  %v1595_v55 = vsel %vm872_vm3, %v1575_v45, 0.0 }
 0x7cb   : > { %v1542_v24 = vpop.f32.mrf.mxu0 }
 0x7cc   : > { %v1577_v37 = vmul.f32 %v1542_v24, %v4562_v42  ;;  %v1604_v56 = vsel %vm872_vm3, %v1578_v48, 0.0 }
 0x7cd   : > { %v4082_v26 = vpop.f32.mrf.mxu0 }
 0x7ce   : > { %v1580_v27 = vmul.f32 %v4082_v26, %v4572_v47  ;;  %v1601_v49 = vsel %vm872_vm3, %v1577_v37, 0.0 }
 0x7cf   : > { %v1552_v28 = vpop.f32.mrf.mxu0 }
 0x7d0   : > { %v1579_v29 = vmul.f32 %v1552_v28, %v4570_v46  ;;  %v1610_v30 = vsel %vm872_vm3, %v1580_v27, 0.0 }
 0x7d1   : > { %1611 = vadd.xlane.f32.xlu1 %v1610_v30  ;;  %v4085_v33 = vpop.f32.mrf.mxu0 }
 0x7d2   : > { %v1582_v34 = vmul.f32 %v4085_v33, %v4580_v13  ;;  %v1607_v41 = vsel %vm872_vm3, %v1579_v29, 0.0 }
 0x7d3   : > { %v1562_v25 = vpop.f32.mrf.mxu0 }
 0x7d4   : > { %v1581_v40 = vmul.f32 %v1562_v25, %v4578_v50  ;;  %v1616_v44 = vsel %vm872_vm3, %v1582_v34, 0.0 }
 0x7d5   : > { %1608 = vadd.xlane.f32.xlu1 %v1607_v41  ;;  %1617 = vadd.xlane.f32.xlu0 %v1616_v44 }
 0x7d6   : > { %v1613_v52 = vsel %vm872_vm3, %v1581_v40, 0.0 }
 0x7d9   : > { %1602 = vadd.xlane.f32.xlu1 %v1601_v49  ;;  %1614 = vadd.xlane.f32.xlu0 %v1613_v52 }
 0x7dd   : > { %1596 = vadd.xlane.f32.xlu1 %v1595_v55  ;;  %1605 = vadd.xlane.f32.xlu0 %v1604_v56 }
 0x7e1   : > { %1590 = vadd.xlane.f32.xlu1 %v1589_v59  ;;  %1599 = vadd.xlane.f32.xlu0 %v1598_v60 }
 0x7e5   : > { %1584 = vadd.xlane.f32.xlu1 %v1583_v62  ;;  %1593 = vadd.xlane.f32.xlu0 %v1592_v63 }
 0x7e9   : > { %1587 = vadd.xlane.f32.xlu0 %v1586_v0 }
 0x85a   : > { %v1612_v2 = vpop.xlane.xlu1 %1611 }
 0x85b   : > { %v3543_v3 = vmul.f32 -1.442695, %v1612_v2 }
 0x85d   : > { %4227 = vpow2.f32 %v3543_v3 }
 0x85e   : > { %v1609_v4 = vpop.xlane.xlu1 %1608  ;;  %v1618_v5 = vpop.xlane.xlu0 %1617 }
 0x85f   : > { %v3545_v6 = vmul.f32 -1.442695, %v1618_v5  ;;  %v3542_v7 = vmul.f32 -1.442695, %v1609_v4 }
 0x861   : > { %4229 = vpow2.f32 %v3545_v6 }
 0x862   : > { %v1603_v8 = vpop.xlane.xlu1 %1602  ;;  %v1615_v9 = vpop.xlane.xlu0 %1614  ;;  %4231 = vpow2.f32 %v3542_v7 }
 0x863   : > { %v3544_v10 = vmul.f32 -1.442695, %v1615_v9  ;;  %v3540_v11 = vmul.f32 -1.442695, %v1603_v8 }
 0x865   : > { %4233 = vpow2.f32 %v3544_v10 }
 0x866   : > { %v1597_v12 = vpop.xlane.xlu1 %1596  ;;  %v1606_v14 = vpop.xlane.xlu0 %1605  ;;  %4235 = vpow2.f32 %v3540_v11 }
 0x867   : > { %v3541_v15 = vmul.f32 -1.442695, %v1606_v14  ;;  %v3538_v16 = vmul.f32 -1.442695, %v1597_v12 }
 0x869   : > { %4237 = vpow2.f32 %v3541_v15 }
 0x86a   : > { %v1591_v17 = vpop.xlane.xlu1 %1590  ;;  %v1600_v18 = vpop.xlane.xlu0 %1599  ;;  %4239 = vpow2.f32 %v3538_v16 }
 0x86b   : > { %v3536_v19 = vmul.f32 -1.442695, %v1591_v17  ;;  %v3539_v20 = vmul.f32 -1.442695, %v1600_v18  ;;  %v4228_v21 = vpop.eup %4227 }
 0x86c   : > { %v1664_v30 = vadd.f32 1.0, %v4228_v21 }
 0x86d   : > { %4241 = vpow2.f32 %v3536_v19 }
 0x86e   : > { %v1585_v22 = vpop.xlane.xlu1 %1584  ;;  %v1594_v23 = vpop.xlane.xlu0 %1593  ;;  %4243 = vpow2.f32 %v3539_v20 }
 0x86f   : > { %v4230_v24 = vpop.eup %4229  ;;  %v3534_v26 = vmul.f32 -1.442695, %v1585_v22  ;;  %v3537_v28 = vmul.f32 -1.442695, %v1594_v23 }
 0x870   : > { %v1666_v27 = vadd.f32 1.0, %v4230_v24  ;;  %v4232_v29 = vpop.eup %4231  ;;  %v1691_v24 = vld [vmem:[#allocation2 + $0x1e0] sm:$0xff] }
 0x871   : > { %v1663_v37 = vadd.f32 1.0, %v4232_v29  ;;  %v1901_v29 = vld [vmem:[#allocation2 + $0x130] sm:$0xff] }
 0x872   : > { %4245 = vrcp.f32 %v1666_v27  ;;  %v1588_v33 = vpop.xlane.xlu0 %1587  ;;  %v4234_v34 = vpop.eup %4233  ;;  %v1778_v27 = vld [vmem:[#allocation2 + $0xc8] sm:$0xff] }
 0x873   : > { %4247 = vpow2.f32 %v3534_v26  ;;  %v3535_v25 = vmul.f32 -1.442695, %v1588_v33  ;;  %v1665_v40 = vadd.f32 1.0, %v4234_v34  ;;  %v4236_v41 = vpop.eup %4235  ;;  %v1779_v26 = vld [vmem:[#allocation2 + $0xd0] sm:$0xff] }
 0x874   : > { %4249 = vpow2.f32 %v3537_v28  ;;  %v1661_v45 = vadd.f32 1.0, %v4236_v41  ;;  %1814 = vmatpush1.msra.mxu0 %v1779_v26  ;;  %v1777_v28 = vld [vmem:[#allocation2 + $0xc0] sm:$0xff]  ;;  %v1899_v34 = vld [vmem:[#allocation2 + $0x110] sm:$0xff]  ;;  %v1893_v41 = vld [vmem:[#allocation2 + $0xf8] sm:$0xff] }
 0x875   : > { %4251 = vrcp.f32 %v1664_v30  ;;  %1815 = vmatprep.subr.mxu0 %v1778_v27  ;;  %v1900_v30 = vld [vmem:[#allocation2 + $0x120] sm:$0xff] }
 0x876   : > { %4253 = vrcp.f32 %v1665_v40  ;;  %v4238_v44 = vpop.eup %4237  ;;  %1816 = vmatpush1.msra.mxu0 %v1777_v28  ;;  %v1898_v40 = vld [vmem:[#allocation2 + $0x100] sm:$0xff] }
 0x877   : > { %4255 = vpow2.f32 %v3535_v25  ;;  %v1662_v48 = vadd.f32 1.0, %v4238_v44  ;;  %v4240_v49 = vpop.eup %4239  ;;  %v1892_v44 = vld [vmem:[#allocation2 + $0xf0] sm:$0xff]  ;;  %2003 = vmatprep.subr.mxu0 %v1893_v41 }
 0x878   : > { %4257 = vrcp.f32 %v1663_v37  ;;  %v1659_v54 = vadd.f32 1.0, %v4240_v49 }
 0x879   : > { %4259 = vrcp.f32 %v1662_v48  ;;  %v1890_v48 = vld [vmem:[#allocation2 + $0xe0] sm:$0xff] }
 0x87a   : > { %v4242_v52 = vpop.eup %4241  ;;  %4261 = vrcp.f32 %v1661_v45  ;;  %v1891_v45 = vld [vmem:[#allocation2 + $0xe8] sm:$0xff] }
 0x87b   : > { %v4244_v53 = vpop.eup %4243  ;;  %v1657_v57 = vadd.f32 1.0, %v4242_v52 }
 0x87c   : > { %v1660_v55 = vadd.f32 1.0, %v4244_v53 }
 0x87e   : > { %4263 = vrcp.f32 %v1660_v55 }
 0x87f   : > { %v4246_v56 = vpop.eup %4245  ;;  %4265 = vrcp.f32 %v1659_v54 }
 0x880   : > { %v4248_v58 = vpop.eup %4247  ;;  %v1703_v59 = vmul.f32 %v4246_v56, %v4580_v13  ;;  %4267 = vrcp.f32 %v1657_v57 }
 0x881   : > { %v4250_v60 = vpop.eup %4249  ;;  %v1655_v1 = vadd.f32 1.0, %v4248_v58 }
 0x882   : > { %v4252_v61 = vpop.eup %4251  ;;  %v1658_v62 = vadd.f32 1.0, %v4250_v60  ;;  %4087 = vmatpush3.msra.mxu1 %v1703_v59 }
 0x883   : > { %v4254_v63 = vpop.eup %4253  ;;  %4088 = vmatprep.subr.mxu1 %v4328_v51  ;;  %v1701_v5 = vmul.f32 %v4252_v61, %v4572_v47 }
 0x884   : > { %v4256_v0 = vpop.eup %4255  ;;  %4269 = vrcp.f32 %v1658_v62  ;;  %v1702_v2 = vmul.f32 %v4254_v63, %v4578_v50 }
 0x885   : > { %v4258_v3 = vpop.eup %4257  ;;  %v1656_v4 = vadd.f32 1.0, %v4256_v0 }
 0x886   : > { %4089 = vmatpush3.msra.mxu1 %v1702_v2  ;;  %v4260_v6 = vpop.eup %4259  ;;  %v1700_v7 = vmul.f32 %v4258_v3, %v4570_v46 }
 0x887   : > { %4271 = vrcp.f32 %v1656_v4  ;;  %4090 = vmatprep.subr.mxu1 %v4328_v51  ;;  %v4262_v8 = vpop.eup %4261  ;;  %v1699_v9 = vmul.f32 %v4260_v6, %v4564_v43 }
 0x888   : > { %4273 = vrcp.f32 %v1655_v1  ;;  %4091 = vmatpush3.msra.mxu1 %v1701_v5  ;;  %v1698_v11 = vmul.f32 %v4262_v8, %v4562_v42 }
 0x889   : > { %4092 = vmatprep.subr.mxu1 %v4328_v51 }
 0x88a   : > { %4093 = vmatpush3.msra.mxu1 %v1700_v7 }
 0x88b   : > { %4094 = vmatprep.subr.mxu1 %v4328_v51  ;;  %v4264_v10 = vpop.eup %4263 }
 0x88c   : > { %4095 = vmatpush3.msra.mxu1 %v1699_v9  ;;  %v4266_v12 = vpop.eup %4265  ;;  %v1697_v14 = vmul.f32 %v4264_v10, %v4556_v39 }
 0x88d   : > { %4096 = vmatprep.subr.mxu1 %v4328_v51  ;;  %v4268_v15 = vpop.eup %4267  ;;  %v1696_v16 = vmul.f32 %v4266_v12, %v4554_v38 }
 0x88e   : > { %4097 = vmatpush3.msra.mxu1 %v1698_v11  ;;  %v1694_v20 = vmul.f32 %v4268_v15, %v4546_v35 }
 0x88f   : > { %4098 = vmatprep.subr.mxu1 %v4328_v51 }
 0x890   : > { %4099 = vmatpush3.msra.mxu1 %v1697_v14 }
 0x891   : > { %v4270_v17 = vpop.eup %4269  ;;  %4100 = vmatprep.subr.mxu1 %v4328_v51 }
 0x892   : > { %4101 = vmatpush3.msra.mxu1 %v1696_v16  ;;  %v1695_v18 = vmul.f32 %v4270_v17, %v4548_v36 }
 0x893   : > { %4102 = vmatprep.subr.mxu1 %v4328_v51 }
 0x894   : > { %v4272_v19 = vpop.eup %4271  ;;  %4103 = vmatpush3.msra.mxu1 %v1695_v18 }
 0x895   : > { %v4274_v21 = vpop.eup %4273  ;;  %4104 = vmatprep.subr.mxu1 %v4328_v51  ;;  %v1693_v22 = vmul.f32 %v4272_v19, %v4540_v32 }
 0x896   : > { %4105 = vmatpush3.msra.mxu1 %v1694_v20  ;;  %v1692_v23 = vmul.f32 %v4274_v21, %v4538_v31 }
 0x897   : > { %4106 = vmatprep.subr.mxu1 %v4328_v51 }
 0x898   : > { %4107 = vmatpush3.msra.mxu1 %v1693_v22 }
 0x899   : > { %4108 = vmatprep.subr.mxu1 %v4328_v51 }
 0x89a   : > { %4109 = vmatpush3.msra.mxu1 %v1692_v23 }
 0x89b   : > { %4111 = vmatmul.mubr.msk.f32.vlgmr.msra.gmra.mxu1 %vm392_vm1, %v1691_v24  ;;  %4113 = vmatprep.subr.mxu1 %v4328_v51 }
 0x89c   : > { %4121 = vmatprep.mubr.msk.f32.mxu1 %vm4329_vm4, %v4328_v51  ;;  %4114 = vmatpush3.msra.mxu1 %v1901_v29 }
 0x89d   : > { %4115 = vmatprep.subr.mxu1 %v4328_v51 }
 0x89e   : > { %4116 = vmatpush3.msra.mxu1 %v1900_v30 }
 0x89f   : > { %4117 = vmatprep.subr.mxu1 %v4328_v51 }
 0x8a0   : > { %4118 = vmatpush3.msra.mxu1 %v1899_v34 }
 0x8a1   : > { %4119 = vmatprep.subr.mxu1 %v4328_v51 }
 0x8a2   : > { %4120 = vmatpush3.msra.mxu1 %v1898_v40 }
 0x8a3   : > { %4124 = vmatprep.subr.mxu1 %v4328_v51 }
 0x95b   : > { %v1773_v33 = vpop.f32.mrf.mxu1 }
 0x95c   : > { %1859 = vrot.lane.b32.xlu1 %v1773_v33, %s4330_s29  ;;  %1856 = vrot.lane.b32.xlu0 %v1773_v33, %s4331_s30  ;;  %v1782_v25 = vrot.slane %v1773_v33, 4 }
 0x95d   : > { %v4112_v37 = vpop.f32.mrf.mxu1 }
 0x95e   : > { %3547 = vmatmul.mubr.msk.f32.vlgmr.msra.gmra.mxu0 %vm872_vm3, %v1782_v25 }
 0x95f   : > { %2004 = vmatpush1.xpose.msra.mxu0 %v1892_v44 }
 0x960   : > { %1862 = vrot.lane.b32.xlu1 %v1773_v33, %s4332_s4  ;;  %1868 = vrot.lane.b32.xlu0 %v1773_v33, %s4333_s5 }
 0x961   : > { %2005 = vmatprep.subr.mxu0 %v1891_v45 }
 0x963   : > { %2006 = vmatpush1.xpose.msra.mxu0 %v1890_v48 }
 0x964   : > { %1865 = vrot.lane.b32.xlu1 %v1773_v33, %s4334_s6  ;;  %1874 = vrot.lane.b32.xlu0 %v1773_v33, %s4335_s7 }
 0x965   : > { %4131 = vmatprep.subr.mxu0 %v4328_v51 }
 0x968   : > { %1871 = vrot.lane.b32.xlu1 %v1773_v33, %s4336_s8 }
 0x96c   : > { %1894 = vrot.lane.b32.xlu1 %v1782_v25, %s4331_s30 }
 0x9ce   : > { %v1860_v49 = vpop.permute.xlu1 %1859  ;;  %v1857_v52 = vpop.permute.xlu0 %1856 }
 0x9cf   : > { %v1877_v53 = vsel %vm872_vm3, %v1773_v33, %v1857_v52 }
 0x9d0   : > { %v1878_v55 = vsel %vm570_vm2, %v1877_v53, %v1860_v49 }
 0x9d2   : > { %v1863_v54 = vpop.permute.xlu1 %1862  ;;  %v1869_v59 = vpop.permute.xlu0 %1868 }
 0x9d3   : > { %v1880_v56 = vsel %vm1879_vm5, %v1878_v55, %v1863_v54 }
 0x9d6   : > { %v1866_v57 = vpop.permute.xlu1 %1865 }
 0x9d7   : > { %v1882_v58 = vsel %vm1881_vm6, %v1880_v56, %v1866_v57 }
 0x9d8   : > { %v1884_v60 = vsel %vm1883_vm7, %v1882_v58, %v1869_v59 }
 0x9da   : > { %v1872_v61 = vpop.permute.xlu1 %1871 }
 0x9db   : > { %v1885_v62 = vsel %vm392_vm1, %v1884_v60, %v1872_v61 }
 0x9de   : > { %v1895_v63 = vpop.permute.xlu1 %1894 }
 0x9df   : > { %v1897_v0 = vsel %vm872_vm3, %v1773_v33, %v1895_v63 }
 0x9e0   : > { %4122 = vmatmul.mubr.msk.f32.vlgmr.msra.gmra.mxu1 %vm570_vm2, %v1897_v0 }
 0x9e1   : > { %4125 = vmatpush3.xpose.msk.msra.mxu1 %vm872_vm3, %v4546_v35  ;;  %4128 = vmatprep.mubr.msk.f32.mxu1 %vm4329_vm4, %v4328_v51 }
 0x9e2   : > { %4126 = vmatprep.subr.mxu1 %v4328_v51 }
 0x9e5   : > { %4127 = vmatpush3.xpose.msk.msra.mxu1 %vm872_vm3, %v4540_v32  ;;  %v1875_v32 = vpop.permute.xlu0 %1874 }
 0x9e6   : > { %4138 = vmatprep.subr.mxu1 %v4328_v51  ;;  %v1887_v35 = vsel %vm1886_vm8, %v1885_v62, %v1875_v32 }
 0x9e8   : > { %4129 = vmatmul.mubr.msk.f32.vlgmr.msra.gmra.mxu1 %vm872_vm3, %v4538_v31 }
 0x9e9   : > { %4139 = vmatpush3.xpose.msk.msra.mxu1 %vm872_vm3, %v4570_v46  ;;  %4142 = vmatprep.mubr.msk.f32.mxu1 %vm4329_vm4, %v4328_v51 }
 0x9ea   : > { %4140 = vmatprep.subr.mxu1 %v4328_v51 }
 0x9ed   : > { %4141 = vmatpush3.xpose.msk.msra.mxu1 %vm872_vm3, %v4564_v43 }
 0x9ee   : > { %4152 = vmatprep.subr.mxu1 %v4328_v51 }
 0x9f0   : > { %4143 = vmatmul.mubr.msk.f32.vlgmr.msra.gmra.mxu1 %vm872_vm3, %v4562_v42 }
 0x9f1   : > { %4160 = vmatprep.mubr.msk.f32.mxu1 %vm4329_vm4, %v4328_v51 }
 0xa1e   : > { %v1851_v31 = vpop.f32.mrf.mxu0 }
 0xa1f   : > { %v1888_v2 = vmul.f32 %v1887_v35, %v1851_v31 }
 0xa20   : > { %v1853_v46 = vpop.f32.mrf.mxu0 }
 0xa21   : > { %v1889_v1 = vmul.f32 %v1887_v35, %v1853_v46 }
 0xa23   : > { %2039 = vmatprep.mubr.f32.mxu0 %v1889_v1 }
 0xa24   : > { %2040 = vmatmul.mubr.f32.vlgmr.msra.gmra.mxu0 %v1888_v2 }
 0xa25   : > { %4132 = vmatpush3.xpose.msk.msra.mxu0 %vm872_vm3, %v4556_v39  ;;  %4135 = vmatprep.mubr.msk.f32.mxu0 %vm4329_vm4, %v4328_v51 }
 0xa26   : > { %4133 = vmatprep.subr.mxu0 %v4328_v51 }
 0xa29   : > { %4134 = vmatpush3.xpose.msk.msra.mxu0 %vm872_vm3, %v4554_v38 }
 0xa2a   : > { %4145 = vmatprep.subr.mxu0 %v4328_v51 }
 0xa2c   : > { %4136 = vmatmul.mubr.msk.f32.vlgmr.msra.gmra.mxu0 %vm872_vm3, %v4548_v36 }
 0xa2d   : > { %4146 = vmatpush3.xpose.msk.msra.mxu0 %vm872_vm3, %v4580_v13  ;;  %4149 = vmatprep.mubr.msk.f32.mxu0 %vm4329_vm4, %v4328_v51 }
 0xa2e   : > { %4147 = vmatprep.subr.mxu0 %v4328_v51 }
 0xa31   : > { %4148 = vmatpush3.xpose.msk.msra.mxu0 %vm872_vm3, %v4578_v50 }
 0xa32   : > { %4163 = vmatprep.subr.mxu0 %v4328_v51 }
 0xa34   : > { %4150 = vmatmul.mubr.msk.f32.vlgmr.msra.gmra.mxu0 %vm872_vm3, %v4572_v47 }
 0xa35   : > { %4167 = vmatprep.mubr.msk.f32.mxu0 %vm4329_vm4, %v4328_v51 }
 0xaa0   : > { %v4725_v36 = vpop.f32.mrf.mxu1 }
 0xaa2   : > { %v4123_v38 = vpop.f32.mrf.mxu1 }
 0xaa8   : > { %v4727_v39 = vpop.f32.mrf.mxu1 }
 0xaa9   : > { %v2131_v42 = vsel %vm2120_vm9, %v4727_v39, -inf  ;;  %v2121_v43 = vsel %vm2120_vm9, %v4727_v39, inf }
 0xaaa   : > { %2132 = vmax.xlane.f32.xlu1 %v2131_v42  ;;  %2122 = vmin.xlane.f32.xlu0 %v2121_v43  ;;  %v4130_v50 = vpop.f32.mrf.mxu1 }
 0xab0   : > { %v4733_v13 = vpop.f32.mrf.mxu1 }
 0xab1   : > { %v2694_v47 = vsel %vm2120_vm9, %v4733_v13, -inf  ;;  %v2684_v3 = vsel %vm2120_vm9, %v4733_v13, inf }
 0xab2   : > { %2695 = vmax.xlane.f32.xlu1 %v2694_v47  ;;  %2685 = vmin.xlane.f32.xlu0 %v2684_v3  ;;  %v4144_v4 = vpop.f32.mrf.mxu1 }
 0xae4   : > { %v4739_v5 = vpop.f32.mrf.mxu0 }
 0xae6   : > { %v2043_v6 = vpop.f32.mrf.mxu0 }
 0xaec   : > { %v4741_v7 = vpop.f32.mrf.mxu0 }
 0xaed   : > { %v2403_v8 = vsel %vm2120_vm9, %v4741_v7, inf  ;;  %v2413_v10 = vsel %vm2120_vm9, %v4741_v7, -inf }
 0xaee   : > { %v4137_v9 = vpop.f32.mrf.mxu0  ;;  %2404 = vmin.xlane.f32.xlu0 %v2403_v8 }
 0xaf2   : > { %2414 = vmax.xlane.f32.xlu0 %v2413_v10 }
 0xaf4   : > { %v4747_v11 = vpop.f32.mrf.mxu0 }
 0xaf5   : > { %v2975_v12 = vsel %vm2120_vm9, %v4747_v11, -inf  ;;  %v2965_v14 = vsel %vm2120_vm9, %v4747_v11, inf }
 0xaf6   : > { %v4151_v15 = vpop.f32.mrf.mxu0  ;;  %2976 = vmax.xlane.f32.xlu1 %v2975_v12  ;;  %2966 = vmin.xlane.f32.xlu0 %v2965_v14 }
 0xb33   : > { %v2133_v16 = vpop.xlane.xlu1 %2132  ;;  %v2123_v17 = vpop.xlane.xlu0 %2122 }
 0xb34   : > { %v2134_v18 = vrot.slane %v2133_v16, 4  ;;  %v2124_v19 = vrot.slane %v2123_v17, 4 }
 0xb36   : > { %v2135_v20 = vmax.f32 %v2133_v16, %v2134_v18  ;;  %v2125_v21 = vmin.f32 %v2123_v17, %v2124_v19 }
 0xb38   : > { %v2136_v22 = vrot.slane %v2135_v20, 2  ;;  %v2126_v23 = vrot.slane %v2125_v21, 2 }
 0xb3a   : > { %v2127_v24 = vmin.f32 %v2125_v21, %v2126_v23  ;;  %v2137_v26 = vmax.f32 %v2135_v20, %v2136_v22  ;;  %v2048_v20 = vlaneseq }
 0xb3b   : > { %v2696_v33 = vpop.xlane.xlu1 %2695  ;;  %v2686_v34 = vpop.xlane.xlu0 %2685 }
 0xb3c   : > { %v2128_v27 = vrot.slane %v2127_v24, 1  ;;  %v2138_v28 = vrot.slane %v2137_v26, 1  ;;  %v2697_v25 = vrot.slane %v2696_v33, 4  ;;  %v2687_v37 = vrot.slane %v2686_v34, 4 }
 0xb3d   : > { %v2157_v23 = vshrl.u32 %v2048_v20, 7 }
 0xb3e   : > { %v2129_v29 = vmin.f32 %v2127_v24, %v2128_v27  ;;  %v2139_v30 = vmax.f32 %v2137_v26, %v2138_v28  ;;  %v2698_v40 = vmax.f32 %v2696_v33, %v2697_v25  ;;  %v2688_v41 = vmin.f32 %v2686_v34, %v2687_v37 }
 0xb3f   : > { %v4768_v25 = vsub.s32 3, %v2157_v23 }
 0xb40   : > { %4171 = vpush %v2129_v29  ;;  %v2699_v49 = vrot.slane %v2698_v40, 2  ;;  %v2689_v52 = vrot.slane %v2688_v41, 2  ;;  %v4762_v29 = vsub.s32 1, %v2157_v23 }
 0xb41   : > { %4173 = vpush %v2139_v30  ;;  %v4764_v30 = vsub.s32 2, %v2157_v23 }
 0xb42   : > { %v2690_v61 = vmin.f32 %v2688_v41, %v2689_v52  ;;  %v2700_v62 = vmax.f32 %v2698_v40, %v2699_v49  ;;  %v4771_v40 = vsub.s32 4, %v2157_v23  ;;  %v4780_v52 = vsub.s32 7, %v2157_v23 }
 0xb44   : > { %v2691_v38 = vrot.slane %v2690_v61, 1  ;;  %v2701_v47 = vrot.slane %v2700_v62, 1 }
 0xb46   : > { %v2692_v9 = vmin.f32 %v2690_v61, %v2691_v38  ;;  %v2702_v12 = vmax.f32 %v2700_v62, %v2701_v47 }
 0xb71   : > { %s4753_s9 = spop %4171 }
 0xb72   : > { %s4174_s10 = spop %4173  ;;  %v2147_v3 = vstv %s4753_s9 }
 0xb73   : > { %s2141_s11 = ssub.f32 %s4174_s10, %s4753_s9  ;;  %v2148_v10 = vsub.f32 %v4727_v39, %v2147_v3  ;;  %v4759_v39 = vsub.s32 0, %v2157_v23 }
 0xb75   : > { %s2144_s14 = smul.f32 0.0625, %s2141_s11 }
 0xb77   : > { %p2145_p1 = scmp.gt.f32.partialorder %s2144_s14, 0.0  ;;  %v2405_v44 = vpop.xlane.xlu0 %2404 }
 0xb78   : > { %v2406_v45 = vrot.slane %v2405_v44, 4 }
 0xb79   : > { %s5081_s14 = smov (!%p2145_p1, %s2144_s14), 1.0 }
 0xb7a   : > { %v2407_v48 = vmin.f32 %v2405_v44, %v2406_v45  ;;  %v2149_v53 = vstv %s5081_s14  ;;  %v4774_v44 = vsub.s32 5, %v2157_v23 }
 0xb7b   : > { %v2415_v54 = vpop.xlane.xlu0 %2414  ;;  %4275 = vrcp.f32 %v2149_v53 }
 0xb7c   : > { %v2408_v55 = vrot.slane %v2407_v48, 2  ;;  %v2416_v56 = vrot.slane %v2415_v54, 4 }
 0xb7e   : > { %v2417_v57 = vmax.f32 %v2415_v54, %v2416_v56  ;;  %v2409_v58 = vmin.f32 %v2407_v48, %v2408_v55  ;;  %v4777_v48 = vsub.s32 6, %v2157_v23 }
 0xb7f   : > { %v2977_v59 = vpop.xlane.xlu1 %2976  ;;  %v2967_v60 = vpop.xlane.xlu0 %2966 }
 0xb80   : > { %v2418_v63 = vrot.slane %v2417_v57, 2  ;;  %v2978_v0 = vrot.slane %v2977_v59, 4  ;;  %v2968_v31 = vrot.slane %v2967_v60, 4  ;;  %v2410_v32 = vrot.slane %v2409_v58, 1 }
 0xb82   : > { %v2979_v35 = vmax.f32 %v2977_v59, %v2978_v0  ;;  %v2969_v46 = vmin.f32 %v2967_v60, %v2968_v31  ;;  %v2411_v1 = vmin.f32 %v2409_v58, %v2410_v32  ;;  %v2419_v2 = vmax.f32 %v2417_v57, %v2418_v63 }
 0xb84   : > { %v2980_v42 = vrot.slane %v2979_v35, 2  ;;  %v2970_v43 = vrot.slane %v2969_v46, 2  ;;  %4177 = vpush %v2411_v1  ;;  %v2420_v50 = vrot.slane %v2419_v2, 1 }
 0xb86   : > { %v2421_v4 = vmax.f32 %v2419_v2, %v2420_v50  ;;  %v2971_v6 = vmin.f32 %v2969_v46, %v2970_v43  ;;  %v2981_v8 = vmax.f32 %v2979_v35, %v2980_v42 }
 0xb88   : > { %4179 = vpush %v2421_v4  ;;  %v2972_v14 = vrot.slane %v2971_v6, 1  ;;  %v2982_v15 = vrot.slane %v2981_v8, 1  ;;  %v4276_v16 = vpop.eup %4275 }
 0xb89   : > { %4183 = vpush %v2692_v9  ;;  %v2151_v17 = vmul.f32 %v4276_v16, %v2148_v10 }
 0xb8a   : > { %4185 = vpush %v2702_v12  ;;  %v2973_v18 = vmin.f32 %v2971_v6, %v2972_v14  ;;  %v2983_v19 = vmax.f32 %v2981_v8, %v2982_v15 }
 0xb8b   : > { %v2152_v21 = vfloor.f32 %v2151_v17 }
 0xb8c   : > { %4189 = vpush %v2973_v18 }
 0xb8d   : > { %4191 = vpush %v2983_v19  ;;  %v2153_v22 = vmax.f32 %v2152_v21, 0.0  ;;  %v4817_v19 = vand.u32 127, %v2048_v20 }
 0xb8f   : > { %v2154_v24 = vmin.f32 %v2153_v22, 15.0 }
 0xb91   : > { %v4175_v26 = vtrunc.f32 %v2154_v24 }
 0xb93   : > { %v4176_v27 = vcvt.f32.s32 %v4175_v26 }
 0xb95   : > { %v2159_v28 = vrot.slane %v4176_v27, %v4759_v39  ;;  %v2170_v33 = vrot.slane %v4176_v27, %v4762_v29  ;;  %v2181_v34 = vrot.slane %v4176_v27, %v4764_v30  ;;  %v2192_v37 = vrot.slane %v4176_v27, %v4768_v25 }
 0xb96   : > { %v2203_v41 = vrot.slane %v4176_v27, %v4771_v40  ;;  %v2214_v45 = vrot.slane %v4176_v27, %v4774_v44  ;;  %v2225_v49 = vrot.slane %v4176_v27, %v4777_v48  ;;  %v2236_v53 = vrot.slane %v4176_v27, %v4780_v52 }
 0xb97   : > { %2165 = vbcast.lane.b32.xlu1 %v2159_v28, 264  ;;  %2161 = vbcast.lane.b32.xlu0 %v2159_v28, 256 }
 0xb9b   : > { %2172 = vbcast.lane.b32.xlu1 %v2170_v33, 256  ;;  %2183 = vbcast.lane.b32.xlu0 %v2181_v34, 256 }
 0xb9f   : > { %2176 = vbcast.lane.b32.xlu1 %v2170_v33, 264  ;;  %2194 = vbcast.lane.b32.xlu0 %v2192_v37, 256 }
 0xba3   : > { %2187 = vbcast.lane.b32.xlu1 %v2181_v34, 264  ;;  %2205 = vbcast.lane.b32.xlu0 %v2203_v41, 256 }
 0xba7   : > { %2198 = vbcast.lane.b32.xlu1 %v2192_v37, 264  ;;  %2216 = vbcast.lane.b32.xlu0 %v2214_v45, 256 }
 0xbab   : > { %2209 = vbcast.lane.b32.xlu1 %v2203_v41, 264  ;;  %2227 = vbcast.lane.b32.xlu0 %v2225_v49, 256 }
 0xbaf   : > { %2220 = vbcast.lane.b32.xlu1 %v2214_v45, 264  ;;  %2238 = vbcast.lane.b32.xlu0 %v2236_v53, 256 }
 0xbb3   : > { %2231 = vbcast.lane.b32.xlu1 %v2225_v49, 264 }
 0xbb5   : > { %s4178_s15 = spop %4177 }
 0xbb6   : > { %v2429_v56 = vstv %s4178_s15 }
 0xbb7   : > { %2242 = vbcast.lane.b32.xlu1 %v2236_v53, 264  ;;  %v2430_v57 = vsub.f32 %v4741_v7, %v2429_v56 }
 0xbb9   : > { %s4180_s16 = spop %4179 }
 0xbba   : > { %s2423_s17 = ssub.f32 %s4180_s16, %s4178_s15  ;;  %s4184_s18 = spop %4183 }
 0xbbb   : > { %s4186_s19 = spop %4185  ;;  %v2710_v58 = vstv %s4184_s18 }
 0xbbc   : > { %s2426_s20 = smul.f32 0.0625, %s2423_s17  ;;  %s2704_s21 = ssub.f32 %s4186_s19, %s4184_s18  ;;  %v2711_v61 = vsub.f32 %v4733_v13, %v2710_v58 }
 0xbbd   : > { %s4787_s23 = spop %4189 }
 0xbbe   : > { %p2427_p2 = scmp.gt.f32.partialorder %s2426_s20, 0.0  ;;  %s2707_s22 = smul.f32 0.0625, %s2704_s21  ;;  %v2991_v12 = vstv %s4787_s23 }
 0xbbf   : > { %s4192_s24 = spop %4191  ;;  %v2992_v16 = vsub.f32 %v4747_v11, %v2991_v12 }
 0xbc0   : > { %s5083_s20 = smov (!%p2427_p2, %s2426_s20), 1.0  ;;  %p2708_p3 = scmp.gt.f32.partialorder %s2707_s22, 0.0 }
 0xbc1   : > { %v2431_v54 = vstv %s5083_s20  ;;  %s2985_s25 = ssub.f32 %s4192_s24, %s4787_s23 }
 0xbc2   : > { %4277 = vrcp.f32 %v2431_v54  ;;  %s5085_s22 = smov (!%p2708_p3, %s2707_s22), 1.0 }
 0xbc3   : > { %v2712_v55 = vstv %s5085_s22  ;;  %s2988_s26 = smul.f32 0.0625, %s2985_s25 }
 0xbc4   : > { %4279 = vrcp.f32 %v2712_v55 }
 0xbc5   : > { %p2989_p4 = scmp.gt.f32.partialorder %s2988_s26, 0.0 }
 0xbc7   : > { %s5087_s26 = smov (!%p2989_p4, %s2988_s26), 1.0 }
 0xbc8   : > { %v2993_v6 = vstv %s5087_s26 }
 0xbc9   : > { %4281 = vrcp.f32 %v2993_v6 }
 0xbcf   : > { %v4278_v59 = vpop.eup %4277 }
 0xbd0   : > { %v2433_v60 = vmul.f32 %v4278_v59, %v2430_v57 }
 0xbd1   : > { %v4280_v62 = vpop.eup %4279 }
 0xbd2   : > { %v2434_v63 = vfloor.f32 %v2433_v60  ;;  %v2714_v0 = vmul.f32 %v4280_v62, %v2711_v61 }
 0xbd4   : > { %v2435_v31 = vmax.f32 %v2434_v63, 0.0  ;;  %v2715_v32 = vfloor.f32 %v2714_v0 }
 0xbd6   : > { %v2436_v35 = vmin.f32 %v2435_v31, 15.0  ;;  %v2716_v46 = vmax.f32 %v2715_v32, 0.0  ;;  %v4282_v15 = vpop.eup %4281 }
 0xbd7   : > { %v2995_v17 = vmul.f32 %v4282_v15, %v2992_v16 }
 0xbd8   : > { %v4181_v1 = vtrunc.f32 %v2436_v35  ;;  %v2717_v2 = vmin.f32 %v2716_v46, 15.0 }
 0xbd9   : > { %v2996_v21 = vfloor.f32 %v2995_v17 }
 0xbda   : > { %v4785_v38 = vcvt.f32.s32 %v4181_v1  ;;  %v4187_v42 = vtrunc.f32 %v2717_v2 }
 0xbdb   : > { %v2997_v11 = vmax.f32 %v2996_v21, 0.0 }
 0xbdc   : > { %v2441_v7 = vrot.slane %v4785_v38, %v4759_v39  ;;  %v4791_v13 = vcvt.f32.s32 %v4187_v42  ;;  %v2452_v43 = vrot.slane %v4785_v38, %v4762_v29  ;;  %v2463_v3 = vrot.slane %v4785_v38, %v4764_v30 }
 0xbdd   : > { %v2474_v8 = vrot.slane %v4785_v38, %v4768_v25  ;;  %v2485_v10 = vrot.slane %v4785_v38, %v4771_v40  ;;  %v2496_v18 = vrot.slane %v4785_v38, %v4774_v44  ;;  %v2507_v26 = vrot.slane %v4785_v38, %v4777_v48 }
 0xbde   : > { %2447 = vbcast.lane.b32.xlu1 %v2441_v7, 264  ;;  %2443 = vbcast.lane.b32.xlu0 %v2441_v7, 256  ;;  %v2722_v50 = vrot.slane %v4791_v13, %v4759_v39  ;;  %v2733_v47 = vrot.slane %v4791_v13, %v4762_v29  ;;  %v2744_v4 = vrot.slane %v4791_v13, %v4764_v30  ;;  %v2998_v37 = vmin.f32 %v2997_v11, 15.0 }
 0xbdf   : > { %v2755_v9 = vrot.slane %v4791_v13, %v4768_v25  ;;  %v2766_v14 = vrot.slane %v4791_v13, %v4771_v40  ;;  %v2777_v22 = vrot.slane %v4791_v13, %v4774_v44  ;;  %v2788_v49 = vrot.slane %v4791_v13, %v4777_v48 }
 0xbe0   : > { %v2518_v61 = vrot.slane %v4785_v38, %v4780_v52  ;;  %v4193_v62 = vtrunc.f32 %v2998_v37 }
 0xbe2   : > { %2458 = vbcast.lane.b32.xlu1 %v2452_v43, 264  ;;  %2454 = vbcast.lane.b32.xlu0 %v2452_v43, 256  ;;  %v4851_v42 = vcvt.f32.s32 %v4193_v62 }
 0xbe4   : > { %v3058_v62 = vrot.slane %v4851_v42, %v4774_v44 }
 0xbe6   : > { %2728 = vbcast.lane.b32.xlu1 %v2722_v50, 264  ;;  %2724 = vbcast.lane.b32.xlu0 %v2722_v50, 256  ;;  %v2799_v50 = vrot.slane %v4791_v13, %v4780_v52  ;;  %v3003_v13 = vrot.slane %v4851_v42, %v4759_v39  ;;  %v3014_v39 = vrot.slane %v4851_v42, %v4762_v29 }
 0xbe7   : > { %v3025_v29 = vrot.slane %v4851_v42, %v4764_v30 }
 0xbea   : > { %2739 = vbcast.lane.b32.xlu1 %v2733_v47, 264  ;;  %2735 = vbcast.lane.b32.xlu0 %v2733_v47, 256 }
 0xbee   : > { %2469 = vbcast.lane.b32.xlu1 %v2463_v3, 264  ;;  %2465 = vbcast.lane.b32.xlu0 %v2463_v3, 256 }
 0xbf2   : > { %2750 = vbcast.lane.b32.xlu1 %v2744_v4, 264  ;;  %2746 = vbcast.lane.b32.xlu0 %v2744_v4, 256 }
 0xbf6   : > { %2480 = vbcast.lane.b32.xlu1 %v2474_v8, 264  ;;  %2476 = vbcast.lane.b32.xlu0 %v2474_v8, 256 }
 0xbfa   : > { %2761 = vbcast.lane.b32.xlu1 %v2755_v9, 264  ;;  %2757 = vbcast.lane.b32.xlu0 %v2755_v9, 256 }
 0xbfe   : > { %2491 = vbcast.lane.b32.xlu1 %v2485_v10, 264  ;;  %2487 = vbcast.lane.b32.xlu0 %v2485_v10, 256 }
 0xc02   : > { %2772 = vbcast.lane.b32.xlu1 %v2766_v14, 264  ;;  %2768 = vbcast.lane.b32.xlu0 %v2766_v14, 256 }
 0xc06   : > { %2502 = vbcast.lane.b32.xlu1 %v2496_v18, 264  ;;  %2498 = vbcast.lane.b32.xlu0 %v2496_v18, 256 }
 0xc09   : > { %v2166_v23 = vpop.permute.xlu1 %2165  ;;  %v2162_v24 = vpop.permute.xlu0 %2161 }
 0xc0a   : > { %vm2245_vm10 = vcmp.eq.s32.totalorder %v2166_v23, %v4817_v19  ;;  %vm2244_vm11 = vcmp.eq.s32.totalorder %v2162_v24, %v4817_v19  ;;  %2783 = vbcast.lane.b32.xlu1 %v2777_v22, 264  ;;  %2779 = vbcast.lane.b32.xlu0 %v2777_v22, 256 }
 0xc0b   : > { %v3552_v20 = vsel %vm2244_vm11, 1.0, %v4328_v51  ;;  %v3553_v53 = vsel %vm2245_vm10, 1.0, %v4328_v51 }
 0xc0c   : > { %v2292_v41 = vsel %vm872_vm3, %v3552_v20, 0.0  ;;  %v2308_v63 = vsel %vm2307_vm14, %v3553_v53, 0.0 }
 0xc0d   : > { %v2173_v27 = vpop.permute.xlu1 %2172  ;;  %v2184_v28 = vpop.permute.xlu0 %2183 }
 0xc0e   : > { %vm2246_vm12 = vcmp.eq.s32.totalorder %v2173_v27, %v4817_v19  ;;  %vm2248_vm13 = vcmp.eq.s32.totalorder %v2184_v28, %v4817_v19  ;;  %2513 = vbcast.lane.b32.xlu1 %v2507_v26, 264  ;;  %2509 = vbcast.lane.b32.xlu0 %v2507_v26, 256 }
 0xc0f   : > { %v3554_v33 = vsel %vm2246_vm12, 1.0, %v4328_v51  ;;  %v3556_v34 = vsel %vm2248_vm13, 1.0, %v4328_v51 }
 0xc10   : > { %v2293_v45 = vsel %vm872_vm3, %v3554_v33, 0.0  ;;  %v2295_v57 = vsel %vm872_vm3, %v3556_v34, 0.0 }
 0xc11   : > { %v2294_v54 = vadd.f32 %v2293_v45, %v2292_v41  ;;  %v2177_v55 = vpop.permute.xlu1 %2176  ;;  %v2195_v56 = vpop.permute.xlu0 %2194 }
 0xc12   : > { %vm2247_vm15 = vcmp.eq.s32.totalorder %v2177_v55, %v4817_v19  ;;  %vm2250_vm0 = vcmp.eq.s32.totalorder %v2195_v56, %v4817_v19  ;;  %2794 = vbcast.lane.b32.xlu1 %v2788_v49, 264  ;;  %2790 = vbcast.lane.b32.xlu0 %v2788_v49, 256 }
 0xc13   : > { %v2296_v58 = vadd.f32 %v2295_v57, %v2294_v54  ;;  %v3555_v59 = vsel %vm2247_vm15, 1.0, %v4328_v51  ;;  %v3558_v60 = vsel %vm2250_vm0, 1.0, %v4328_v51  ;;  %v3036_v54 = vrot.slane %v4851_v42, %v4768_v25 }
 0xc14   : > { %v2309_v0 = vsel %vm2307_vm14, %v3555_v59, 0.0  ;;  %v2297_v31 = vsel %vm872_vm3, %v3558_v60, 0.0 }
 0xc15   : > { %v2310_v32 = vadd.f32 %v2309_v0, %v2308_v63  ;;  %v2298_v35 = vadd.f32 %v2297_v31, %v2296_v58  ;;  %v2188_v46 = vpop.permute.xlu1 %2187  ;;  %v2206_v1 = vpop.permute.xlu0 %2205  ;;  %v3047_v58 = vrot.slane %v4851_v42, %v4771_v40  ;;  %v3069_v63 = vrot.slane %v4851_v42, %v4777_v48  ;;  %v3190_v0 = vld [vmem:[#allocation2 + $0x180] sm:$0xff]  ;;  %v3189_v31 = vld [vmem:[#allocation2 + $0x170] sm:$0xff] }
 0xc16   : > { %vm2249_vm1 = vcmp.eq.s32.totalorder %v2188_v46, %v4817_v19  ;;  %vm2252_vm4 = vcmp.eq.s32.totalorder %v2206_v1, %v4817_v19  ;;  %2524 = vbcast.lane.b32.xlu1 %v2518_v61, 264  ;;  %2520 = vbcast.lane.b32.xlu0 %v2518_v61, 256  ;;  %v3080_v40 = vrot.slane %v4851_v42, %v4780_v52 }
 0xc17   : > { %v3557_v2 = vsel %vm2249_vm1, 1.0, %v4328_v51  ;;  %v3560_v38 = vsel %vm2252_vm4, 1.0, %v4328_v51  ;;  %4153 = vmatpush3.msra.mxu1 %v3190_v0 }
 0xc18   : > { %v2311_v7 = vsel %vm2307_vm14, %v3557_v2, 0.0  ;;  %v2299_v43 = vsel %vm872_vm3, %v3560_v38, 0.0  ;;  %4154 = vmatprep.subr.mxu1 %v4328_v51 }
 0xc19   : > { %v2312_v47 = vadd.f32 %v2311_v7, %v2310_v32  ;;  %v2300_v3 = vadd.f32 %v2299_v43, %v2298_v35  ;;  %v2199_v4 = vpop.permute.xlu1 %2198  ;;  %v2217_v6 = vpop.permute.xlu0 %2216  ;;  %v3188_v32 = vld [vmem:[#allocation2 + $0x160] sm:$0xff]  ;;  %4155 = vmatpush3.msra.mxu1 %v3189_v31 }
 0xc1a   : > { %vm2251_vm5 = vcmp.eq.s32.totalorder %v2199_v4, %v4817_v19  ;;  %vm2254_vm6 = vcmp.eq.s32.totalorder %v2217_v6, %v4817_v19  ;;  %2805 = vbcast.lane.b32.xlu1 %v2799_v50, 264  ;;  %2801 = vbcast.lane.b32.xlu0 %v2799_v50, 256 }
 0xc1b   : > { %v3559_v8 = vsel %vm2251_vm5, 1.0, %v4328_v51  ;;  %v3562_v9 = vsel %vm2254_vm6, 1.0, %v4328_v51  ;;  %4156 = vmatprep.subr.mxu1 %v4328_v51 }
 0xc1c   : > { %v2313_v10 = vsel %vm2307_vm14, %v3559_v8, 0.0  ;;  %v2301_v12 = vsel %vm872_vm3, %v3562_v9, 0.0  ;;  %4157 = vmatpush3.msra.mxu1 %v3188_v32 }
 0xc1d   : > { %v2314_v14 = vadd.f32 %v2313_v10, %v2312_v47  ;;  %v2302_v15 = vadd.f32 %v2301_v12, %v2300_v3  ;;  %v2210_v16 = vpop.permute.xlu1 %2209  ;;  %v2228_v17 = vpop.permute.xlu0 %2227  ;;  %4158 = vmatprep.subr.mxu1 %v4328_v51 }
 0xc1e   : > { %vm2253_vm7 = vcmp.eq.s32.totalorder %v2210_v16, %v4817_v19  ;;  %vm2256_vm8 = vcmp.eq.s32.totalorder %v2228_v17, %v4817_v19  ;;  %3009 = vbcast.lane.b32.xlu1 %v3003_v13, 264  ;;  %3005 = vbcast.lane.b32.xlu0 %v3003_v13, 256 }
 0xc1f   : > { %v3561_v18 = vsel %vm2253_vm7, 1.0, %v4328_v51  ;;  %v3564_v21 = vsel %vm2256_vm8, 1.0, %v4328_v51 }
 0xc20   : > { %v2315_v22 = vsel %vm2307_vm14, %v3561_v18, 0.0  ;;  %v2303_v23 = vsel %vm872_vm3, %v3564_v21, 0.0 }
 0xc21   : > { %v2316_v24 = vadd.f32 %v2315_v22, %v2314_v14  ;;  %v2304_v11 = vadd.f32 %v2303_v23, %v2302_v15  ;;  %v2221_v26 = vpop.permute.xlu1 %2220  ;;  %v2239_v20 = vpop.permute.xlu0 %2238 }
 0xc22   : > { %vm2255_vm9 = vcmp.eq.s32.totalorder %v2221_v26, %v4817_v19  ;;  %vm2258_vm10 = vcmp.eq.s32.totalorder %v2239_v20, %v4817_v19  ;;  %3020 = vbcast.lane.b32.xlu1 %v3014_v39, 264  ;;  %3016 = vbcast.lane.b32.xlu0 %v3014_v39, 256 }
 0xc23   : > { %v3563_v27 = vsel %vm2255_vm9, 1.0, %v4328_v51  ;;  %v3566_v28 = vsel %vm2258_vm10, 1.0, %v4328_v51 }
 0xc24   : > { %v2317_v33 = vsel %vm2307_vm14, %v3563_v27, 0.0  ;;  %v2305_v34 = vsel %vm872_vm3, %v3566_v28, 0.0 }
 0xc25   : > { %v2318_v37 = vadd.f32 %v2317_v33, %v2316_v24  ;;  %v2306_v41 = vadd.f32 %v2305_v34, %v2304_v11  ;;  %v2232_v45 = vpop.permute.xlu1 %2231 }
 0xc26   : > { %vm2257_vm11 = vcmp.eq.s32.totalorder %v2232_v45, %v4817_v19  ;;  %3031 = vbcast.lane.b32.xlu1 %v3025_v29, 264  ;;  %3027 = vbcast.lane.b32.xlu0 %v3025_v29, 256 }
 0xc27   : > { %v3565_v49 = vsel %vm2257_vm11, 1.0, %v4328_v51  ;;  %v2323_v60 = vsel %vm872_vm3, %v2306_v41, 0.0 }
 0xc28   : > { %v2319_v53 = vsel %vm2307_vm14, %v3565_v49, 0.0 }
 0xc29   : > { %v2320_v55 = vadd.f32 %v2319_v53, %v2318_v37  ;;  %v2243_v56 = vpop.permute.xlu1 %2242 }
 0xc2a   : > { %vm2259_vm12 = vcmp.eq.s32.totalorder %v2243_v56, %v4817_v19  ;;  %3042 = vbcast.lane.b32.xlu1 %v3036_v54, 264  ;;  %3038 = vbcast.lane.b32.xlu0 %v3036_v54, 256 }
 0xc2b   : > { %v3567_v30 = vsel %vm2259_vm12, 1.0, %v4328_v51 }
 0xc2c   : > { %v2321_v57 = vsel %vm2307_vm14, %v3567_v30, 0.0 }
 0xc2d   : > { %v2322_v59 = vadd.f32 %v2321_v57, %v2320_v55 }
 0xc2e   : > { %3053 = vbcast.lane.b32.xlu1 %v3047_v58, 264  ;;  %3049 = vbcast.lane.b32.xlu0 %v3047_v58, 256 }
 0xc2f   : > { %v2324_v25 = vsel %vm2307_vm14, %v2322_v59, 0.0 }
 0xc30   : > { %v4893_v61 = vadd.f32 %v2324_v25, %v2323_v60 }
 0xc32   : > { %3064 = vbcast.lane.b32.xlu1 %v3058_v62, 264  ;;  %3060 = vbcast.lane.b32.xlu0 %v3058_v62, 256 }
 0xc36   : > { %3075 = vbcast.lane.b32.xlu1 %v3069_v63, 264  ;;  %3071 = vbcast.lane.b32.xlu0 %v3069_v63, 256 }
 0xc3a   : > { %3086 = vbcast.lane.b32.xlu1 %v3080_v40, 264  ;;  %3082 = vbcast.lane.b32.xlu0 %v3080_v40, 256 }
 0xc50   : > { %v2448_v44 = vpop.permute.xlu1 %2447  ;;  %v2444_v48 = vpop.permute.xlu0 %2443 }
 0xc51   : > { %vm2527_vm13 = vcmp.eq.s32.totalorder %v2448_v44, %v4817_v19  ;;  %vm2526_vm15 = vcmp.eq.s32.totalorder %v2444_v48, %v4817_v19 }
 0xc52   : > { %v3572_v52 = vsel %vm2527_vm13, 1.0, %v4328_v51  ;;  %v3571_v35 = vsel %vm2526_vm15, 1.0, %v4328_v51 }
 0xc53   : > { %v2589_v42 = vsel %vm2307_vm14, %v3572_v52, 0.0  ;;  %v2574_v7 = vsel %vm872_vm3, %v3571_v35, 0.0 }
 0xc54   : > { %v2459_v46 = vpop.permute.xlu1 %2458  ;;  %v2455_v1 = vpop.permute.xlu0 %2454 }
 0xc55   : > { %vm2529_vm0 = vcmp.eq.s32.totalorder %v2459_v46, %v4817_v19  ;;  %vm2528_vm1 = vcmp.eq.s32.totalorder %v2455_v1, %v4817_v19 }
 0xc56   : > { %v3574_v2 = vsel %vm2529_vm0, 1.0, %v4328_v51  ;;  %v3573_v38 = vsel %vm2528_vm1, 1.0, %v4328_v51 }
 0xc57   : > { %v2590_v43 = vsel %vm2307_vm14, %v3574_v2, 0.0  ;;  %v2575_v50 = vsel %vm872_vm3, %v3573_v38, 0.0 }
 0xc58   : > { %v2591_v47 = vadd.f32 %v2590_v43, %v2589_v42  ;;  %v2576_v3 = vadd.f32 %v2575_v50, %v2574_v7  ;;  %v2729_v4 = vpop.permute.xlu1 %2728  ;;  %v2725_v6 = vpop.permute.xlu0 %2724 }
 0xc59   : > { %vm2808_vm4 = vcmp.eq.s32.totalorder %v2729_v4, %v4817_v19  ;;  %vm2807_vm5 = vcmp.eq.s32.totalorder %v2725_v6, %v4817_v19 }
 0xc5a   : > { %v3591_v8 = vsel %vm2808_vm4, 1.0, %v4328_v51  ;;  %v3590_v9 = vsel %vm2807_vm5, 1.0, %v4328_v51 }
 0xc5b   : > { %v2870_v15 = vsel %vm2307_vm14, %v3591_v8, 0.0  ;;  %v2855_v16 = vsel %vm872_vm3, %v3590_v9, 0.0 }
 0xc5c   : > { %v2740_v10 = vpop.permute.xlu1 %2739  ;;  %v2736_v12 = vpop.permute.xlu0 %2735 }
 0xc5d   : > { %vm2810_vm6 = vcmp.eq.s32.totalorder %v2740_v10, %v4817_v19  ;;  %vm2809_vm7 = vcmp.eq.s32.totalorder %v2736_v12, %v4817_v19 }
 0xc5e   : > { %v3593_v13 = vsel %vm2810_vm6, 1.0, %v4328_v51  ;;  %v3592_v14 = vsel %vm2809_vm7, 1.0, %v4328_v51 }
 0xc5f   : > { %v2871_v17 = vsel %vm2307_vm14, %v3593_v13, 0.0  ;;  %v2856_v18 = vsel %vm872_vm3, %v3592_v14, 0.0 }
 0xc60   : > { %v2872_v21 = vadd.f32 %v2871_v17, %v2870_v15  ;;  %v2857_v22 = vadd.f32 %v2856_v18, %v2855_v16  ;;  %v2470_v23 = vpop.permute.xlu1 %2469  ;;  %v2466_v39 = vpop.permute.xlu0 %2465 }
 0xc61   : > { %vm2531_vm8 = vcmp.eq.s32.totalorder %v2470_v23, %v4817_v19  ;;  %vm2530_vm9 = vcmp.eq.s32.totalorder %v2466_v39, %v4817_v19 }
 0xc62   : > { %v3576_v24 = vsel %vm2531_vm8, 1.0, %v4328_v51  ;;  %v3575_v11 = vsel %vm2530_vm9, 1.0, %v4328_v51 }
 0xc63   : > { %v2592_v26 = vsel %vm2307_vm14, %v3576_v24, 0.0  ;;  %v2577_v20 = vsel %vm872_vm3, %v3575_v11, 0.0 }
 0xc64   : > { %v2593_v27 = vadd.f32 %v2592_v26, %v2591_v47  ;;  %v2578_v28 = vadd.f32 %v2577_v20, %v2576_v3  ;;  %v2751_v33 = vpop.permute.xlu1 %2750  ;;  %v2747_v34 = vpop.permute.xlu0 %2746 }
 0xc65   : > { %vm2812_vm10 = vcmp.eq.s32.totalorder %v2751_v33, %v4817_v19  ;;  %vm2811_vm11 = vcmp.eq.s32.totalorder %v2747_v34, %v4817_v19 }
 0xc66   : > { %v3595_v29 = vsel %vm2812_vm10, 1.0, %v4328_v51  ;;  %v3594_v37 = vsel %vm2811_vm11, 1.0, %v4328_v51 }
 0xc67   : > { %v2873_v41 = vsel %vm2307_vm14, %v3595_v29, 0.0  ;;  %v2858_v45 = vsel %vm872_vm3, %v3594_v37, 0.0  ;;  %v2326_v37 = vrot.slane %v4893_v61, 4 }
 0xc68   : > { %v2874_v49 = vadd.f32 %v2873_v41, %v2872_v21  ;;  %v2859_v53 = vadd.f32 %v2858_v45, %v2857_v22  ;;  %v2481_v54 = vpop.permute.xlu1 %2480  ;;  %v2477_v55 = vpop.permute.xlu0 %2476 }
 0xc69   : > { %vm2533_vm12 = vcmp.eq.s32.totalorder %v2481_v54, %v4817_v19  ;;  %vm2532_vm13 = vcmp.eq.s32.totalorder %v2477_v55, %v4817_v19 }
 0xc6a   : > { %v3578_v56 = vsel %vm2533_vm12, 1.0, %v4328_v51  ;;  %v3577_v30 = vsel %vm2532_vm13, 1.0, %v4328_v51 }
 0xc6b   : > { %v2594_v57 = vsel %vm2307_vm14, %v3578_v56, 0.0  ;;  %v2579_v58 = vsel %vm872_vm3, %v3577_v30, 0.0 }
 0xc6c   : > { %v2595_v59 = vadd.f32 %v2594_v57, %v2593_v27  ;;  %v2580_v60 = vadd.f32 %v2579_v58, %v2578_v28  ;;  %v2762_v25 = vpop.permute.xlu1 %2761  ;;  %v2758_v62 = vpop.permute.xlu0 %2757  ;;  %v2327_v57 = vadd.f32 %v2326_v37, %v4893_v61 }
 0xc6d   : > { %vm2814_vm15 = vcmp.eq.s32.totalorder %v2762_v25, %v4817_v19  ;;  %vm2813_vm0 = vcmp.eq.s32.totalorder %v2758_v62, %v4817_v19 }
 0xc6e   : > { %v3597_v63 = vsel %vm2814_vm15, 1.0, %v4328_v51  ;;  %v3596_v40 = vsel %vm2813_vm0, 1.0, %v4328_v51 }
 0xc6f   : > { %v2875_v0 = vsel %vm2307_vm14, %v3597_v63, 0.0  ;;  %v2860_v31 = vsel %vm872_vm3, %v3596_v40, 0.0 }
 0xc70   : > { %v2876_v32 = vadd.f32 %v2875_v0, %v2874_v49  ;;  %v2861_v44 = vadd.f32 %v2860_v31, %v2859_v53  ;;  %v2492_v48 = vpop.permute.xlu1 %2491  ;;  %v2488_v52 = vpop.permute.xlu0 %2487  ;;  %v2328_v31 = vrot.slane %v2327_v57, 2 }
 0xc71   : > { %vm2535_vm1 = vcmp.eq.s32.totalorder %v2492_v48, %v4817_v19  ;;  %vm2534_vm4 = vcmp.eq.s32.totalorder %v2488_v52, %v4817_v19 }
 0xc72   : > { %v3580_v35 = vsel %vm2535_vm1, 1.0, %v4328_v51  ;;  %v3579_v46 = vsel %vm2534_vm4, 1.0, %v4328_v51 }
 0xc73   : > { %v2596_v1 = vsel %vm2307_vm14, %v3580_v35, 0.0  ;;  %v2581_v2 = vsel %vm872_vm3, %v3579_v46, 0.0 }
 0xc74   : > { %v2597_v38 = vadd.f32 %v2596_v1, %v2595_v59  ;;  %v2582_v42 = vadd.f32 %v2581_v2, %v2580_v60  ;;  %v2773_v7 = vpop.permute.xlu1 %2772  ;;  %v2769_v43 = vpop.permute.xlu0 %2768 }
 0xc75   : > { %vm2816_vm5 = vcmp.eq.s32.totalorder %v2773_v7, %v4817_v19  ;;  %vm2815_vm6 = vcmp.eq.s32.totalorder %v2769_v43, %v4817_v19  ;;  %v2329_v7 = vadd.f32 %v2328_v31, %v2327_v57 }
 0xc76   : > { %v3599_v50 = vsel %vm2816_vm5, 1.0, %v4328_v51  ;;  %v3598_v47 = vsel %vm2815_vm6, 1.0, %v4328_v51 }
 0xc77   : > { %v2877_v3 = vsel %vm2307_vm14, %v3599_v50, 0.0  ;;  %v2862_v4 = vsel %vm872_vm3, %v3598_v47, 0.0 }
 0xc78   : > { %v2878_v6 = vadd.f32 %v2877_v3, %v2876_v32  ;;  %v2863_v8 = vadd.f32 %v2862_v4, %v2861_v44  ;;  %v2503_v9 = vpop.permute.xlu1 %2502  ;;  %v2499_v10 = vpop.permute.xlu0 %2498 }
 0xc79   : > { %vm2537_vm7 = vcmp.eq.s32.totalorder %v2503_v9, %v4817_v19  ;;  %vm2536_vm8 = vcmp.eq.s32.totalorder %v2499_v10, %v4817_v19 }
 0xc7a   : > { %v3582_v12 = vsel %vm2537_vm7, 1.0, %v4328_v51  ;;  %v3581_v13 = vsel %vm2536_vm8, 1.0, %v4328_v51 }
 0xc7b   : > { %v2598_v14 = vsel %vm2307_vm14, %v3582_v12, 0.0  ;;  %v2583_v15 = vsel %vm872_vm3, %v3581_v13, 0.0  ;;  %v2330_v12 = vrot.slane %v2329_v7, 1 }
 0xc7c   : > { %v2599_v16 = vadd.f32 %v2598_v14, %v2597_v38  ;;  %v2584_v17 = vadd.f32 %v2583_v15, %v2582_v42  ;;  %v2784_v18 = vpop.permute.xlu1 %2783  ;;  %v2780_v21 = vpop.permute.xlu0 %2779 }
 0xc7d   : > { %vm2818_vm9 = vcmp.eq.s32.totalorder %v2784_v18, %v4817_v19  ;;  %vm2817_vm10 = vcmp.eq.s32.totalorder %v2780_v21, %v4817_v19 }
 0xc7e   : > { %v3601_v22 = vsel %vm2818_vm9, 1.0, %v4328_v51  ;;  %v3600_v23 = vsel %vm2817_vm10, 1.0, %v4328_v51  ;;  %vm3176_vm10 = vcmask 1040384  }
 0xc7f   : > { %v2879_v39 = vsel %vm2307_vm14, %v3601_v22, 0.0  ;;  %v2864_v24 = vsel %vm872_vm3, %v3600_v23, 0.0  ;;  %v2331_v23 = vadd.f32 %v2330_v12, %v2329_v7 }
 0xc80   : > { %v2880_v11 = vadd.f32 %v2879_v39, %v2878_v6  ;;  %v2865_v26 = vadd.f32 %v2864_v24, %v2863_v8  ;;  %v2514_v20 = vpop.permute.xlu1 %2513  ;;  %v2510_v27 = vpop.permute.xlu0 %2509 }
 0xc81   : > { %vm2539_vm11 = vcmp.eq.s32.totalorder %v2514_v20, %v4817_v19  ;;  %vm2538_vm12 = vcmp.eq.s32.totalorder %v2510_v27, %v4817_v19 }
 0xc82   : > { %v3584_v28 = vsel %vm2539_vm11, 1.0, %v4328_v51  ;;  %v3583_v33 = vsel %vm2538_vm12, 1.0, %v4328_v51 }
 0xc83   : > { %v2600_v34 = vsel %vm2307_vm14, %v3584_v28, 0.0  ;;  %v2585_v29 = vsel %vm872_vm3, %v3583_v33, 0.0  ;;  %v2332_v33 = vmul.f32 0.010416667, %v2331_v23 }
 0xc84   : > { %v2601_v41 = vadd.f32 %v2600_v34, %v2599_v16  ;;  %v2586_v45 = vadd.f32 %v2585_v29, %v2584_v17  ;;  %v2795_v49 = vpop.permute.xlu1 %2794  ;;  %v2791_v53 = vpop.permute.xlu0 %2790 }
 0xc85   : > { %vm2820_vm13 = vcmp.eq.s32.totalorder %v2795_v49, %v4817_v19  ;;  %vm2819_vm15 = vcmp.eq.s32.totalorder %v2791_v53, %v4817_v19 }
 0xc86   : > { %v3603_v54 = vsel %vm2820_vm13, 1.0, %v4328_v51  ;;  %v3602_v55 = vsel %vm2819_vm15, 1.0, %v4328_v51  ;;  %vm3178_vm13 = vcmask 1041408  }
 0xc87   : > { %v2881_v56 = vsel %vm2307_vm14, %v3603_v54, 0.0  ;;  %v2866_v30 = vsel %vm872_vm3, %v3602_v55, 0.0 }
 0xc88   : > { %v2882_v58 = vadd.f32 %v2881_v56, %v2880_v11  ;;  %v2867_v59 = vadd.f32 %v2866_v30, %v2865_v26  ;;  %v2525_v60 = vpop.permute.xlu1 %2524  ;;  %v2521_v25 = vpop.permute.xlu0 %2520 }
 0xc89   : > { %vm2541_vm0 = vcmp.eq.s32.totalorder %v2525_v60, %v4817_v19  ;;  %vm2540_vm1 = vcmp.eq.s32.totalorder %v2521_v25, %v4817_v19 }
 0xc8a   : > { %v3586_v62 = vsel %vm2541_vm0, 1.0, %v4328_v51  ;;  %v3585_v63 = vsel %vm2540_vm1, 1.0, %v4328_v51 }
 0xc8b   : > { %v2602_v40 = vsel %vm2307_vm14, %v3586_v62, 0.0  ;;  %v2587_v0 = vsel %vm872_vm3, %v3585_v63, 0.0 }
 0xc8c   : > { %v2603_v32 = vadd.f32 %v2602_v40, %v2601_v41  ;;  %v2588_v44 = vadd.f32 %v2587_v0, %v2586_v45  ;;  %v2806_v61 = vpop.permute.xlu1 %2805  ;;  %v2802_v48 = vpop.permute.xlu0 %2801 }
 0xc8d   : > { %vm2822_vm4 = vcmp.eq.s32.totalorder %v2806_v61, %v4817_v19  ;;  %vm2821_vm5 = vcmp.eq.s32.totalorder %v2802_v48, %v4817_v19 }
 0xc8e   : > { %v2605_v52 = vsel %vm2307_vm14, %v2603_v32, 0.0  ;;  %v2604_v35 = vsel %vm872_vm3, %v2588_v44, 0.0  ;;  %v3605_v46 = vsel %vm2822_vm4, 1.0, %v4328_v51  ;;  %v3604_v1 = vsel %vm2821_vm5, 1.0, %v4328_v51 }
 0xc8f   : > { %v2606_v2 = vadd.f32 %v2605_v52, %v2604_v35  ;;  %v2883_v38 = vsel %vm2307_vm14, %v3605_v46, 0.0  ;;  %v2868_v42 = vsel %vm872_vm3, %v3604_v1, 0.0 }
 0xc90   : > { %v2884_v43 = vadd.f32 %v2883_v38, %v2882_v58  ;;  %v2869_v50 = vadd.f32 %v2868_v42, %v2867_v59  ;;  %v3010_v47 = vpop.permute.xlu1 %3009  ;;  %v3006_v3 = vpop.permute.xlu0 %3005 }
 0xc91   : > { %v2607_v4 = vrot.slane %v2606_v2, 4  ;;  %vm3089_vm7 = vcmp.eq.s32.totalorder %v3010_v47, %v4817_v19  ;;  %vm3088_vm9 = vcmp.eq.s32.totalorder %v3006_v3, %v4817_v19 }
 0xc92   : > { %v2886_v6 = vsel %vm2307_vm14, %v2884_v43, 0.0  ;;  %v2885_v8 = vsel %vm872_vm3, %v2869_v50, 0.0  ;;  %v3610_v37 = vsel %vm3089_vm7, 1.0, %v4328_v51  ;;  %v3609_v53 = vsel %vm3088_vm9, 1.0, %v4328_v51 }
 0xc93   : > { %v2608_v9 = vadd.f32 %v2607_v4, %v2606_v2  ;;  %v2887_v10 = vadd.f32 %v2886_v6, %v2885_v8  ;;  %v3151_v60 = vsel %vm2307_vm14, %v3610_v37, 0.0  ;;  %v3136_v63 = vsel %vm872_vm3, %v3609_v53, 0.0 }
 0xc94   : > { %v3021_v13 = vpop.permute.xlu1 %3020  ;;  %v3017_v14 = vpop.permute.xlu0 %3016 }
 0xc95   : > { %v2609_v15 = vrot.slane %v2608_v9, 2  ;;  %v2888_v16 = vrot.slane %v2887_v10, 4  ;;  %vm3091_vm6 = vcmp.eq.s32.totalorder %v3021_v13, %v4817_v19  ;;  %vm3090_vm8 = vcmp.eq.s32.totalorder %v3017_v14, %v4817_v19 }
 0xc96   : > { %v3612_v20 = vsel %vm3091_vm6, 1.0, %v4328_v51  ;;  %v3611_v41 = vsel %vm3090_vm8, 1.0, %v4328_v51 }
 0xc97   : > { %v2610_v17 = vadd.f32 %v2609_v15, %v2608_v9  ;;  %v2889_v18 = vadd.f32 %v2888_v16, %v2887_v10  ;;  %v3152_v54 = vsel %vm2307_vm14, %v3612_v20, 0.0  ;;  %v3137_v58 = vsel %vm872_vm3, %v3611_v41, 0.0 }
 0xc98   : > { %v3032_v21 = vpop.permute.xlu1 %3031  ;;  %v3028_v22 = vpop.permute.xlu0 %3027  ;;  %v3153_v32 = vadd.f32 %v3152_v54, %v3151_v60  ;;  %v3138_v44 = vadd.f32 %v3137_v58, %v3136_v63  ;;  %v3266_v63 = vld [vmem:[#allocation2 + $0x1a0] sm:$0xff] }
 0xc99   : > { %v2611_v39 = vrot.slane %v2610_v17, 1  ;;  %v2890_v24 = vrot.slane %v2889_v18, 2  ;;  %vm3093_vm11 = vcmp.eq.s32.totalorder %v3032_v21, %v4817_v19  ;;  %vm3092_vm12 = vcmp.eq.s32.totalorder %v3028_v22, %v4817_v19 }
 0xc9a   : > { %v3614_v55 = vsel %vm3093_vm11, 1.0, %v4328_v51  ;;  %v3613_v56 = vsel %vm3092_vm12, 1.0, %v4328_v51  ;;  %vm3180_vm11 = vcmask 1042432  }
 0xc9b   : > { %v2891_v11 = vadd.f32 %v2890_v24, %v2889_v18  ;;  %v2612_v26 = vadd.f32 %v2611_v39, %v2610_v17  ;;  %v3154_v40 = vsel %vm2307_vm14, %v3614_v55, 0.0  ;;  %v3139_v0 = vsel %vm872_vm3, %v3613_v56, 0.0 }
 0xc9c   : > { %v3043_v27 = vpop.permute.xlu1 %3042  ;;  %v3039_v28 = vpop.permute.xlu0 %3038  ;;  %v3155_v2 = vadd.f32 %v3154_v40, %v3153_v32  ;;  %v3140_v38 = vadd.f32 %v3139_v0, %v3138_v44  ;;  %v3191_v40 = vld [vmem:[#allocation2 + $0x190] ss:$0 sm:$0xff] }
 0xc9d   : > { %v2613_v34 = vmul.f32 0.010416667, %v2612_v26  ;;  %v2892_v29 = vrot.slane %v2891_v11, 1  ;;  %vm3095_vm15 = vcmp.eq.s32.totalorder %v3043_v27, %v4817_v19  ;;  %vm3094_vm0 = vcmp.eq.s32.totalorder %v3039_v28, %v4817_v19 }
 0xc9e   : > { %v3616_v25 = vsel %vm3095_vm15, 1.0, %v4328_v51  ;;  %v3615_v62 = vsel %vm3094_vm0, 1.0, %v4328_v51 }
 0xc9f   : > { %v2893_v45 = vadd.f32 %v2892_v29, %v2891_v11  ;;  %v3177_v49 = vsel %vm3176_vm10, %v2332_v33, %v2613_v34  ;;  %v3156_v46 = vsel %vm2307_vm14, %v3616_v25, 0.0  ;;  %v3141_v1 = vsel %vm872_vm3, %v3615_v62, 0.0  ;;  %v3267_v62 = vld [vmem:[#allocation2 + $0x1b0] sm:$0xff] }
 0xca0   : > { %v3054_v30 = vpop.permute.xlu1 %3053  ;;  %v3050_v57 = vpop.permute.xlu0 %3049  ;;  %v3157_v47 = vadd.f32 %v3156_v46, %v3155_v2  ;;  %v3142_v3 = vadd.f32 %v3141_v1, %v3140_v38  ;;  %4164 = vmatpush3.msra.mxu0 %v3267_v62 }
 0xca1   : > { %vm3097_vm1 = vcmp.eq.s32.totalorder %v3054_v30, %v4817_v19  ;;  %vm3096_vm4 = vcmp.eq.s32.totalorder %v3050_v57, %v4817_v19  ;;  %v2894_v59 = vmul.f32 0.010416667, %v2893_v45  ;;  %v2042_v30 = vadd.f32 %v4739_v5, %v4725_v36  ;;  %v2045_v57 = vld [vmem:[#allocation2 + $0x140] ss:$0 sm:$0xff]  ;;  %4165 = vmatprep.subr.mxu0 %v4328_v51 }
 0xca2   : > { %v3618_v61 = vsel %vm3097_vm1, 1.0, %v4328_v51  ;;  %v3617_v48 = vsel %vm3096_vm4, 1.0, %v4328_v51  ;;  %4166 = vmatpush3.msra.mxu0 %v3266_v63  ;;  %v3268_v5 = vld [vmem:[#allocation2 + $0x1c0] ss:$0 sm:$0xff] }
 0xca3   : > { %v3179_v31 = vsel %vm3178_vm13, %v3177_v49, %v2894_v59  ;;  %v3158_v43 = vsel %vm2307_vm14, %v3618_v61, 0.0  ;;  %v3143_v50 = vsel %vm872_vm3, %v3617_v48, 0.0  ;;  %v2046_v58 = vadd.f32 %v2045_v57, %v2042_v30 }
 0xca4   : > { %v3065_v52 = vpop.permute.xlu1 %3064  ;;  %v3061_v35 = vpop.permute.xlu0 %3060  ;;  %v3159_v10 = vadd.f32 %v3158_v43, %v3157_v47  ;;  %v3144_v12 = vadd.f32 %v3143_v50, %v3142_v3 }
 0xca5   : > { %vm3099_vm5 = vcmp.eq.s32.totalorder %v3065_v52, %v4817_v19  ;;  %vm3098_vm6 = vcmp.eq.s32.totalorder %v3061_v35, %v4817_v19  ;;  %v2047_v59 = vmax.f32 %v2046_v58, 0.0 }
 0xca6   : > { %v3620_v42 = vsel %vm3099_vm5, 1.0, %v4328_v51  ;;  %v3619_v7 = vsel %vm3098_vm6, 1.0, %v4328_v51 }
 0xca7   : > { %v3160_v8 = vsel %vm2307_vm14, %v3620_v42, 0.0  ;;  %v3145_v9 = vsel %vm872_vm3, %v3619_v7, 0.0 }
 0xca8   : > { %v3076_v4 = vpop.permute.xlu1 %3075  ;;  %v3072_v6 = vpop.permute.xlu0 %3071  ;;  %v3161_v17 = vadd.f32 %v3160_v8, %v3159_v10  ;;  %v3146_v18 = vadd.f32 %v3145_v9, %v3144_v12 }
 0xca9   : > { %vm3101_vm7 = vcmp.eq.s32.totalorder %v3076_v4, %v4817_v19  ;;  %vm3100_vm8 = vcmp.eq.s32.totalorder %v3072_v6, %v4817_v19 }
 0xcaa   : > { %v3622_v13 = vsel %vm3101_vm7, 1.0, %v4328_v51  ;;  %v3621_v14 = vsel %vm3100_vm8, 1.0, %v4328_v51 }
 0xcab   : > { %v3162_v15 = vsel %vm2307_vm14, %v3622_v13, 0.0  ;;  %v3147_v16 = vsel %vm872_vm3, %v3621_v14, 0.0 }
 0xcac   : > { %v3087_v21 = vpop.permute.xlu1 %3086  ;;  %v3083_v22 = vpop.permute.xlu0 %3082  ;;  %v3163_v23 = vadd.f32 %v3162_v15, %v3161_v17  ;;  %v3148_v39 = vadd.f32 %v3147_v16, %v3146_v18 }
 0xcad   : > { %vm3103_vm9 = vcmp.eq.s32.totalorder %v3087_v21, %v4817_v19  ;;  %vm3102_vm10 = vcmp.eq.s32.totalorder %v3083_v22, %v4817_v19  ;;  %v3187_v19 = vld [vmem:[#allocation2 + $0x150] sm:$0xff] }
 0xcae   : > { %v3624_v24 = vsel %vm3103_vm9, 1.0, %v4328_v51  ;;  %v3623_v11 = vsel %vm3102_vm10, 1.0, %v4328_v51  ;;  %4159 = vmatpush3.msra.mxu1 %v3187_v19 }
 0xcaf   : > { %v3164_v26 = vsel %vm2307_vm14, %v3624_v24, 0.0  ;;  %v3149_v20 = vsel %vm872_vm3, %v3623_v11, 0.0 }
 0xcb0   : > { %v3165_v27 = vadd.f32 %v3164_v26, %v3163_v23  ;;  %v3150_v28 = vadd.f32 %v3149_v20, %v3148_v39 }
 0xcb2   : > { %v3167_v33 = vsel %vm2307_vm14, %v3165_v27, 0.0  ;;  %v3166_v34 = vsel %vm872_vm3, %v3150_v28, 0.0 }
 0xcb3   : > { %v3168_v29 = vadd.f32 %v3167_v33, %v3166_v34 }
 0xcb5   : > { %v3169_v37 = vrot.slane %v3168_v29, 4 }
 0xcb7   : > { %v3170_v41 = vadd.f32 %v3169_v37, %v3168_v29 }
 0xcb9   : > { %v3171_v45 = vrot.slane %v3170_v41, 2 }
 0xcbb   : > { %v3172_v49 = vadd.f32 %v3171_v45, %v3170_v41 }
 0xcbd   : > { %v3173_v53 = vrot.slane %v3172_v49, 1 }
 0xcbf   : > { %v3174_v54 = vadd.f32 %v3173_v53, %v3172_v49 }
 0xcc1   : > { %v3175_v55 = vmul.f32 0.010416667, %v3174_v54 }
 0xcc3   : > { %v3181_v56 = vsel %vm3180_vm11, %v3179_v31, %v3175_v55 }
 0xcc4   : > { %3183 = vrot.lane.b32.xlu0 %v3181_v56, %s4331_s30  ;;  %s203_s30 = scalar_lea.vmem %s5076_s3, %s3436_s27 }
 0xd36   : > { %v3184_v60 = vpop.permute.xlu0 %3183 }
 0xd37   : > { %v3186_v25 = vsel %vm872_vm3, %v2047_v59, %v3184_v60 }
 0xd38   : > { %4161 = vmatmul.mubr.msk.f32.vlgmr.msra.gmra.mxu1 %vm570_vm2, %v3186_v25  ;;  %vm3348_vm2 = vcmask 3072  }
 0xdf8   : > { %v3261_v0 = vpop.f32.mrf.mxu1 }
 0xdf9   : > { %v3262_v31 = vadd.f32 %v3261_v0, %v3191_v40 }
 0xdfa   : > { %v4162_v32 = vpop.f32.mrf.mxu1 }
 0xdfb   : > { %v3265_v36 = vmax.f32 %v3262_v31, 0.0 }
 0xdfd   : > { %4168 = vmatmul.mubr.msk.f32.vlgmr.msra.gmra.mxu0 %vm872_vm3, %v3265_v36 }
 0xebd   : > { %v3338_v44 = vpop.f32.mrf.mxu0 }
 0xebe   : > { %v3339_v61 = vadd.f32 %v3338_v44, %v3268_v5 }
 0xebf   : > { %v4169_v48 = vpop.f32.mrf.mxu0 }
 0xec0   : > { %v3627_v52 = vmul.f32 -1.442695, %v3339_v61 }
 0xec2   : > { %4283 = vpow2.f32 %v3627_v52 }
 0xecf   : > { %v4284_v35 = vpop.eup %4283 }
 0xed0   : > { %v3345_v46 = vadd.f32 1.0, %v4284_v35 }
 0xed2   : > { %4285 = vrcp.f32 %v3345_v46 }
 0xedf   : > { %v4286_v51 = vpop.eup %4285 }
 0xee0   : > { %3349 = vst.msk [vmem:[%s203_s30] sm:$0xf] %vm3348_vm2, %v4286_v51 }
 0xee1 PF: > { %s14_s12 = sadd.s32 1, %s4323_s12  }
 0xee2   : > { %p11_p5 = scmp.ge.s32.totalorder %s14_s12, 6  }
 0xee4   :  { %13 = sbr.rel (!%p11_p5) target bundleno = 1 (0x1), region = 70 }
 0xee9   :  { %3369 = vsyncpa [#allocation3], 1 }
 0xeea   :  { %3371 = vsyncpa [#allocation3 + $0x1], 1 }

</bundles_post_ra>
